<compile_context>
chip_gen: v7x
topology: tpu7x:2x2x1
jax: 0.10.0
libtpu: 0.0.40
codegen_flags: <defaults>
</compile_context>

<pallas_src>
import jax
import jax.numpy as jnp
import numpy as np
from jax import lax
from jax.experimental import pallas as pl
from jax.experimental.pallas import tpu as pltpu

_COMPILER_PARAMS = pltpu.CompilerParams(
    dimension_semantics=("parallel",),
    vmem_limit_bytes=32 * 1024 * 1024,   # fits v7x's 64 MiB physical VMEM
)


# ----------------------------- Pallas kernels -----------------------------

def _conv_pool_kernel(xs_ref, w_ref, b_ref, o_ref):
    """Fused 3x3 conv (pad=1) + bias + ReLU + 2x2/2 max-pool, one batch tile.

    xs_ref : (1, 4, K9, N)  tap-stacked slabs, one per pool corner (bf16).
                            K9 = 9*cin (zero-padded to a multiple of 8),
                            N  = Bt * Ho * Wo  (batch folded into lanes).
    w_ref  : (cout, K9)     bf16 weights, K index = (kh*3+kw)*cin + ci.
    b_ref  : (cout, 1)      f32 bias.
    o_ref  : (1, cout, N)   pooled output (f32), lane index = b*Ho*Wo + r*Wo+s.
    """
    w = w_ref[...]

    def corner(c):
        # One MXU matmul per pool corner; K carries all 9 taps * cin.
        # Per-corner ref read keeps the live working set to a few slabs.
        return jnp.dot(w, xs_ref[0, c], preferred_element_type=jnp.float32)

    pooled = jnp.maximum(jnp.maximum(corner(0), corner(1)),
                         jnp.maximum(corner(2), corner(3)))
    # bias + ReLU after the 4-way max is equivalent to the reference order
    # (per-channel constant bias, monotone ReLU).
    o_ref[0] = jnp.maximum(pooled + b_ref[...], 0.0)


def _fc_head_kernel(x_ref, w1_ref, b1_ref, w2_ref, b2_ref, o_ref):
    """Fused fc1 + ReLU + fc2 on one M-tile of rows (fc2 N zero-padded to 128)."""
    x = x_ref[...].astype(jnp.bfloat16)
    h = jnp.dot(x, w1_ref[...], preferred_element_type=jnp.float32) + b1_ref[...]
    h = jnp.maximum(h, 0.0).astype(jnp.bfloat16)
    o_ref[...] = (jnp.dot(h, w2_ref[...], preferred_element_type=jnp.float32)
                  + b2_ref[...])


# ------------------------------ wrappers -----------------------------------

def _pick_bt(batch, l):
    """Images per grid step: keep N = bt*l lane-dense but bounded (~2k lanes)."""
    cap = max(1, 2048 // l)
    bt = min(batch, cap)
    while batch % bt:
        bt -= 1
    return bt


def corner_tap_slabs(x_nchw, bt):
    """Stride-2 'shifted corner', tap-stacked slabs for the fused conv kernel.

    out[t, 2*py+px, (kh*3+kw)*cin+ci, b*Ho*Wo + r*Wo + s]
        = xpad[t*bt + b, ci, 2r+py+kh, 2s+px+kw]

    Done in XLA (BlockSpecs cannot express stride-2 windows) so the kernel
    only ever sees contiguous 2-D slabs feeding plain MXU matmuls.
    """
    B, C, H, W = x_nchw.shape
    Ho, Wo = H // 2, W // 2
    L = Ho * Wo
    xp = jnp.pad(x_nchw, ((0, 0), (0, 0), (1, 1), (1, 1)))
    corners = []
    for py in range(2):
        for px in range(2):
            taps = [xp[:, :, py + kh: py + kh + 2 * Ho - 1: 2,
                       px + kw: px + kw + 2 * Wo - 1: 2]
                    for kh in range(3) for kw in range(3)]
            corners.append(jnp.stack(taps, axis=1))            # (B, 9, C, Ho, Wo)
    xs = jnp.stack(corners, axis=1).reshape(B, 4, 9 * C, L)    # (B, 4, 9C, L)
    k_pad = (-9 * C) % 8
    if k_pad:
        xs = jnp.pad(xs, ((0, 0), (0, 0), (0, k_pad), (0, 0)))
    k9 = xs.shape[2]
    nbt = B // bt
    xs = (xs.reshape(nbt, bt, 4, k9, L)
            .transpose(0, 2, 3, 1, 4)            # fold batch into the lane dim
            .reshape(nbt, 4, k9, bt * L))
    return xs.astype(jnp.bfloat16)


def conv3x3_relu_pool(xs, w, b):
    nbt, _, k9, n = xs.shape
    cout = w.shape[0]
    return pl.pallas_call(
        _conv_pool_kernel,
        out_shape=jax.ShapeDtypeStruct((nbt, cout, n), jnp.float32),
        grid=(nbt,),
        in_specs=[
            pl.BlockSpec((1, 4, k9, n), lambda t: (t, 0, 0, 0)),
            # TODO(synk): pipeline_mode=pl.Buffered(1) on the constant weight/
            # bias specs to skip pointless double-buffering (VMEM is not the
            # binding constraint here, so left off for compile safety).
            pl.BlockSpec((cout, k9), lambda t: (0, 0)),
            pl.BlockSpec((cout, 1), lambda t: (0, 0)),
        ],
        out_specs=pl.BlockSpec((1, cout, n), lambda t: (t, 0, 0)),
        compiler_params=_COMPILER_PARAMS,
    )(xs, w, b)


def _to_nchw(y, bt, cout, ho, wo):
    """(nbt, cout, bt*L) -> (B, cout, ho, wo); tiny XLA transpose between stages."""
    nbt = y.shape[0]
    return (y.reshape(nbt, cout, bt, ho * wo)
             .transpose(0, 2, 1, 3)
             .reshape(nbt * bt, cout, ho, wo))


def fc_head(x, w1t, b1, w2t, b2):
    m, k = x.shape
    h = w1t.shape[1]
    n = w2t.shape[1]                  # padded to 128
    tm = min(m, 256)
    return pl.pallas_call(
        _fc_head_kernel,
        out_shape=jax.ShapeDtypeStruct((m, n), jnp.float32),
        grid=(pl.cdiv(m, tm),),
        in_specs=[
            pl.BlockSpec((tm, k), lambda i: (i, 0)),
            pl.BlockSpec((k, h), lambda i: (0, 0)),
            pl.BlockSpec((1, h), lambda i: (0, 0)),
            pl.BlockSpec((h, n), lambda i: (0, 0)),
            pl.BlockSpec((1, n), lambda i: (0, 0)),
        ],
        out_specs=pl.BlockSpec((tm, n), lambda i: (i, 0)),
        compiler_params=_COMPILER_PARAMS,
    )(x, w1t, b1, w2t, b2)


# ----------------------------- forward pass --------------------------------

def prepare_params(p):
    """Pre-permute / pre-cast weights once, OUTSIDE jit (no per-call work)."""
    def conv_w(w):
        cout, cin = w.shape[0], w.shape[1]
        wt = jnp.transpose(w, (0, 2, 3, 1)).reshape(cout, 9 * cin)
        k_pad = (-9 * cin) % 8
        if k_pad:
            wt = jnp.pad(wt, ((0, 0), (0, k_pad)))
        return wt.astype(jnp.bfloat16)

    n_pad = 128 - 6
    return {
        "w1": conv_w(p["w1"]), "b1": p["b1"].reshape(32, 1),
        "w2": conv_w(p["w2"]), "b2": p["b2"].reshape(64, 1),
        "wfc1t": p["wfc1"].T.astype(jnp.bfloat16),               # (3136, 128)
        "bfc1": p["bfc1"].reshape(1, 128),
        "wfc2t": jnp.pad(p["wfc2"].T, ((0, 0), (0, n_pad))).astype(jnp.bfloat16),
        "bfc2": jnp.pad(p["bfc2"], (0, n_pad)).reshape(1, 128),
    }


def cnn_forward(x_nchw, pp):
    B = x_nchw.shape[0]
    # TODO(synk): fuse conv1 -> corner-decompose -> conv2 (+ FC) into a single
    # pallas_call per batch tile (needs in-kernel stride-2 corner extraction).
    bt1 = _pick_bt(B, 14 * 14)
    y1 = conv3x3_relu_pool(corner_tap_slabs(x_nchw, bt1), pp["w1"], pp["b1"])
    y1 = _to_nchw(y1, bt1, 32, 14, 14)                        # (B, 32, 14, 14)

    bt2 = _pick_bt(B, 7 * 7)
    y2 = conv3x3_relu_pool(corner_tap_slabs(y1, bt2), pp["w2"], pp["b2"])
    y2 = _to_nchw(y2, bt2, 64, 7, 7)                          # (B, 64, 7, 7)

    flat = y2.reshape(B, 64 * 7 * 7)                          # torch view(B,-1) order
    logits = fc_head(flat, pp["wfc1t"], pp["bfc1"], pp["wfc2t"], pp["bfc2"])
    return logits[:, :6]


# ----------------------- pure-JAX reference (NCHW) --------------------------

def reference_forward(x, p):
    dn = ("NCHW", "OIHW", "NCHW")
    hi = lax.Precision.HIGHEST
    y = lax.conv_general_dilated(x, p["w1"], (1, 1), ((1, 1), (1, 1)),
                                 dimension_numbers=dn, precision=hi)
    y = jnp.maximum(y + p["b1"].reshape(1, -1, 1, 1), 0.0)
    y = lax.reduce_window(y, -jnp.inf, lax.max, (1, 1, 2, 2), (1, 1, 2, 2), "VALID")
    y = lax.conv_general_dilated(y, p["w2"], (1, 1), ((1, 1), (1, 1)),
                                 dimension_numbers=dn, precision=hi)
    y = jnp.maximum(y + p["b2"].reshape(1, -1, 1, 1), 0.0)
    y = lax.reduce_window(y, -jnp.inf, lax.max, (1, 1, 2, 2), (1, 1, 2, 2), "VALID")
    flat = y.reshape(y.shape[0], -1)
    h = jnp.maximum(jnp.dot(flat, p["wfc1"].T, precision=hi) + p["bfc1"], 0.0)
    return jnp.dot(h, p["wfc2"].T, precision=hi) + p["bfc2"]


# --------------------------------- main --------------------------------------

def init_params(key):
    ks = jax.random.split(key, 8)
    f32 = jnp.float32
    return {
        "w1": 0.05 * jax.random.normal(ks[0], (32, 1, 3, 3), f32),
        "b1": 0.05 * jax.random.normal(ks[1], (32,), f32),
        "w2": 0.05 * jax.random.normal(ks[2], (64, 32, 3, 3), f32),
        "b2": 0.05 * jax.random.normal(ks[3], (64,), f32),
        "wfc1": 0.02 * jax.random.normal(ks[4], (128, 7 * 7 * 64), f32),
        "bfc1": 0.02 * jax.random.normal(ks[5], (128,), f32),
        "wfc2": 0.05 * jax.random.normal(ks[6], (6, 128), f32),
        "bfc2": 0.05 * jax.random.normal(ks[7], (6,), f32),
    }


if __name__ == "__main__":
    key = jax.random.PRNGKey(0)
    k_x, k_p = jax.random.split(key)
    params = init_params(k_p)
    # Input must be 28x28 so the flattened size is 7*7*64 (matches fc1).
    x = jax.random.normal(k_x, (2, 1, 28, 28), jnp.float32)

    prepared = prepare_params(params)            # one-time, outside jit
    out = jax.jit(cnn_forward)(x, prepared)
    out = jax.block_until_ready(out)

    ref = jax.block_until_ready(jax.jit(reference_forward)(x, params))
    assert out.shape == (2, 6)
    # Kernel path intentionally uses bf16 MXU operands (default MXU precision
    # truncates anyway); reference is true f32 HIGHEST, hence the loose tol.
    np.testing.assert_allclose(np.asarray(out), np.asarray(ref),
                               rtol=2e-2, atol=2e-2)
    print("KERNEL_OK")
</pallas_src>

<mosaic_0001>
module attributes {stable_mosaic.version = 11 : i64} {
  func.func @_conv_pool_kernel(%arg0: i32, %arg1: memref<1x4x16x392xbf16, #tpu.memory_space<vmem>>, %arg2: memref<32x16xbf16, #tpu.memory_space<vmem>>, %arg3: memref<32x1xf32, #tpu.memory_space<vmem>>, %arg4: memref<1x32x392xf32, #tpu.memory_space<vmem>>) attributes {dimension_semantics = [#tpu.dimension_semantics<parallel>], iteration_bounds = array<i64: 1>, scalar_prefetch = 0 : i64, scratch_operands = 0 : i64, tpu.core_type = #tpu.core_type<tc>, window_params = [{transform_indices = @transform_0, window_bounds = array<i64: 1, 4, 16, 392>}, {pipeline_mode = #tpu.pipeline_mode<synchronous>, transform_indices = @transform_1, window_bounds = array<i64: 32, 16>}, {pipeline_mode = #tpu.pipeline_mode<synchronous>, transform_indices = @transform_2, window_bounds = array<i64: 32, 1>}, {transform_indices = @transform_3, window_bounds = array<i64: 1, 32, 392>}]} {
    %c0 = arith.constant 0 : index
    %c0_0 = arith.constant 0 : index
    %0 = vector.load %arg2[%c0, %c0_0] : memref<32x16xbf16, #tpu.memory_space<vmem>>, vector<32x16xbf16>
    %c0_1 = arith.constant 0 : index
    %c0_2 = arith.constant 0 : index
    %c0_3 = arith.constant 0 : index
    %c0_4 = arith.constant 0 : index
    %1 = vector.load %arg1[%c0_1, %c0_2, %c0_3, %c0_4] : memref<1x4x16x392xbf16, #tpu.memory_space<vmem>>, vector<1x1x16x392xbf16>
    %2 = vector.shape_cast %1 : vector<1x1x16x392xbf16> to vector<16x392xbf16>
    %cst = arith.constant dense<0.000000e+00> : vector<32x392xf32>
    %3 = tpu.matmul %0, %2, %cst {dimension_numbers = #tpu.dot_dimension_numbers<[1], [0], [0], [1], [0, 0, 1, 1], [], []>} : vector<32x16xbf16>, vector<16x392xbf16>, vector<32x392xf32> -> vector<32x392xf32>
    %c0_5 = arith.constant 0 : index
    %c1 = arith.constant 1 : index
    %c0_6 = arith.constant 0 : index
    %c0_7 = arith.constant 0 : index
    %4 = vector.load %arg1[%c0_5, %c1, %c0_6, %c0_7] : memref<1x4x16x392xbf16, #tpu.memory_space<vmem>>, vector<1x1x16x392xbf16>
    %5 = vector.shape_cast %4 : vector<1x1x16x392xbf16> to vector<16x392xbf16>
    %cst_8 = arith.constant dense<0.000000e+00> : vector<32x392xf32>
    %6 = tpu.matmul %0, %5, %cst_8 {dimension_numbers = #tpu.dot_dimension_numbers<[1], [0], [0], [1], [0, 0, 1, 1], [], []>} : vector<32x16xbf16>, vector<16x392xbf16>, vector<32x392xf32> -> vector<32x392xf32>
    %7 = arith.maximumf %3, %6 : vector<32x392xf32>
    %c0_9 = arith.constant 0 : index
    %c2 = arith.constant 2 : index
    %c0_10 = arith.constant 0 : index
    %c0_11 = arith.constant 0 : index
    %8 = vector.load %arg1[%c0_9, %c2, %c0_10, %c0_11] : memref<1x4x16x392xbf16, #tpu.memory_space<vmem>>, vector<1x1x16x392xbf16>
    %9 = vector.shape_cast %8 : vector<1x1x16x392xbf16> to vector<16x392xbf16>
    %cst_12 = arith.constant dense<0.000000e+00> : vector<32x392xf32>
    %10 = tpu.matmul %0, %9, %cst_12 {dimension_numbers = #tpu.dot_dimension_numbers<[1], [0], [0], [1], [0, 0, 1, 1], [], []>} : vector<32x16xbf16>, vector<16x392xbf16>, vector<32x392xf32> -> vector<32x392xf32>
    %c0_13 = arith.constant 0 : index
    %c3 = arith.constant 3 : index
    %c0_14 = arith.constant 0 : index
    %c0_15 = arith.constant 0 : index
    %11 = vector.load %arg1[%c0_13, %c3, %c0_14, %c0_15] : memref<1x4x16x392xbf16, #tpu.memory_space<vmem>>, vector<1x1x16x392xbf16>
    %12 = vector.shape_cast %11 : vector<1x1x16x392xbf16> to vector<16x392xbf16>
    %cst_16 = arith.constant dense<0.000000e+00> : vector<32x392xf32>
    %13 = tpu.matmul %0, %12, %cst_16 {dimension_numbers = #tpu.dot_dimension_numbers<[1], [0], [0], [1], [0, 0, 1, 1], [], []>} : vector<32x16xbf16>, vector<16x392xbf16>, vector<32x392xf32> -> vector<32x392xf32>
    %14 = arith.maximumf %10, %13 : vector<32x392xf32>
    %15 = arith.maximumf %7, %14 : vector<32x392xf32>
    %c0_17 = arith.constant 0 : index
    %c0_18 = arith.constant 0 : index
    %16 = vector.load %arg3[%c0_17, %c0_18] : memref<32x1xf32, #tpu.memory_space<vmem>>, vector<32x1xf32>
    %17 = vector.broadcast %16 : vector<32x1xf32> to vector<32x392xf32>
    %18 = arith.addf %15, %17 : vector<32x392xf32>
    %cst_19 = arith.constant 0.000000e+00 : f32
    %19 = vector.broadcast %cst_19 : f32 to vector<32x392xf32>
    %20 = arith.maximumf %18, %19 : vector<32x392xf32>
    %c0_20 = arith.constant 0 : index
    %c0_21 = arith.constant 0 : index
    %c0_22 = arith.constant 0 : index
    %21 = vector.load %arg4[%c0_20, %c0_21, %c0_22] : memref<1x32x392xf32, #tpu.memory_space<vmem>>, vector<1x32x392xf32>
    %22 = vector.shape_cast %21 : vector<1x32x392xf32> to vector<32x392xf32>
    %23 = vector.shape_cast %20 : vector<32x392xf32> to vector<1x32x392xf32>
    tpu.vector_store %arg4[%c0_20, %c0_21, %c0_22], %23 {strides = array<i32>} : memref<1x32x392xf32, #tpu.memory_space<vmem>>, vector<1x32x392xf32>,
    return
  }
  func.func @transform_0(%arg0: i32) -> (i32, i32, i32, i32) {
    %c0_i32 = arith.constant 0 : i32
    %c0_i32_0 = arith.constant 0 : i32
    %c0_i32_1 = arith.constant 0 : i32
    %c0_i32_2 = arith.constant 0 : i32
    return %arg0, %c0_i32, %c0_i32_0, %c0_i32_1 : i32, i32, i32, i32
  }
  func.func @transform_1(%arg0: i32) -> (i32, i32) {
    %c0_i32 = arith.constant 0 : i32
    %c0_i32_0 = arith.constant 0 : i32
    %c0_i32_1 = arith.constant 0 : i32
    return %c0_i32, %c0_i32_0 : i32, i32
  }
  func.func @transform_2(%arg0: i32) -> (i32, i32) {
    %c0_i32 = arith.constant 0 : i32
    %c0_i32_0 = arith.constant 0 : i32
    %c0_i32_1 = arith.constant 0 : i32
    return %c0_i32, %c0_i32_0 : i32, i32
  }
  func.func @transform_3(%arg0: i32) -> (i32, i32, i32) {
    %c0_i32 = arith.constant 0 : i32
    %c0_i32_0 = arith.constant 0 : i32
    %c0_i32_1 = arith.constant 0 : i32
    return %arg0, %c0_i32, %c0_i32_0 : i32, i32, i32
  }
}

module attributes {stable_mosaic.version = 11 : i64} {
  func.func @_conv_pool_kernel(%arg0: i32, %arg1: memref<1x4x288x98xbf16, #tpu.memory_space<vmem>>, %arg2: memref<64x288xbf16, #tpu.memory_space<vmem>>, %arg3: memref<64x1xf32, #tpu.memory_space<vmem>>, %arg4: memref<1x64x98xf32, #tpu.memory_space<vmem>>) attributes {dimension_semantics = [#tpu.dimension_semantics<parallel>], iteration_bounds = array<i64: 1>, scalar_prefetch = 0 : i64, scratch_operands = 0 : i64, tpu.core_type = #tpu.core_type<tc>, window_params = [{transform_indices = @transform_0, window_bounds = array<i64: 1, 4, 288, 98>}, {pipeline_mode = #tpu.pipeline_mode<synchronous>, transform_indices = @transform_1, window_bounds = array<i64: 64, 288>}, {pipeline_mode = #tpu.pipeline_mode<synchronous>, transform_indices = @transform_2, window_bounds = array<i64: 64, 1>}, {transform_indices = @transform_3, window_bounds = array<i64: 1, 64, 98>}]} {
    %c0 = arith.constant 0 : index
    %c0_0 = arith.constant 0 : index
    %0 = vector.load %arg2[%c0, %c0_0] : memref<64x288xbf16, #tpu.memory_space<vmem>>, vector<64x288xbf16>
    %c0_1 = arith.constant 0 : index
    %c0_2 = arith.constant 0 : index
    %c0_3 = arith.constant 0 : index
    %c0_4 = arith.constant 0 : index
    %1 = vector.load %arg1[%c0_1, %c0_2, %c0_3, %c0_4] : memref<1x4x288x98xbf16, #tpu.memory_space<vmem>>, vector<1x1x288x98xbf16>
    %2 = vector.shape_cast %1 : vector<1x1x288x98xbf16> to vector<288x98xbf16>
    %cst = arith.constant dense<0.000000e+00> : vector<64x98xf32>
    %3 = tpu.matmul %0, %2, %cst {dimension_numbers = #tpu.dot_dimension_numbers<[1], [0], [0], [1], [0, 0, 1, 1], [], []>} : vector<64x288xbf16>, vector<288x98xbf16>, vector<64x98xf32> -> vector<64x98xf32>
    %c0_5 = arith.constant 0 : index
    %c1 = arith.constant 1 : index
    %c0_6 = arith.constant 0 : index
    %c0_7 = arith.constant 0 : index
    %4 = vector.load %arg1[%c0_5, %c1, %c0_6, %c0_7] : memref<1x4x288x98xbf16, #tpu.memory_space<vmem>>, vector<1x1x288x98xbf16>
    %5 = vector.shape_cast %4 : vector<1x1x288x98xbf16> to vector<288x98xbf16>
    %cst_8 = arith.constant dense<0.000000e+00> : vector<64x98xf32>
    %6 = tpu.matmul %0, %5, %cst_8 {dimension_numbers = #tpu.dot_dimension_numbers<[1], [0], [0], [1], [0, 0, 1, 1], [], []>} : vector<64x288xbf16>, vector<288x98xbf16>, vector<64x98xf32> -> vector<64x98xf32>
    %7 = arith.maximumf %3, %6 : vector<64x98xf32>
    %c0_9 = arith.constant 0 : index
    %c2 = arith.constant 2 : index
    %c0_10 = arith.constant 0 : index
    %c0_11 = arith.constant 0 : index
    %8 = vector.load %arg1[%c0_9, %c2, %c0_10, %c0_11] : memref<1x4x288x98xbf16, #tpu.memory_space<vmem>>, vector<1x1x288x98xbf16>
    %9 = vector.shape_cast %8 : vector<1x1x288x98xbf16> to vector<288x98xbf16>
    %cst_12 = arith.constant dense<0.000000e+00> : vector<64x98xf32>
    %10 = tpu.matmul %0, %9, %cst_12 {dimension_numbers = #tpu.dot_dimension_numbers<[1], [0], [0], [1], [0, 0, 1, 1], [], []>} : vector<64x288xbf16>, vector<288x98xbf16>, vector<64x98xf32> -> vector<64x98xf32>
    %c0_13 = arith.constant 0 : index
    %c3 = arith.constant 3 : index
    %c0_14 = arith.constant 0 : index
    %c0_15 = arith.constant 0 : index
    %11 = vector.load %arg1[%c0_13, %c3, %c0_14, %c0_15] : memref<1x4x288x98xbf16, #tpu.memory_space<vmem>>, vector<1x1x288x98xbf16>
    %12 = vector.shape_cast %11 : vector<1x1x288x98xbf16> to vector<288x98xbf16>
    %cst_16 = arith.constant dense<0.000000e+00> : vector<64x98xf32>
    %13 = tpu.matmul %0, %12, %cst_16 {dimension_numbers = #tpu.dot_dimension_numbers<[1], [0], [0], [1], [0, 0, 1, 1], [], []>} : vector<64x288xbf16>, vector<288x98xbf16>, vector<64x98xf32> -> vector<64x98xf32>
    %14 = arith.maximumf %10, %13 : vector<64x98xf32>
    %15 = arith.maximumf %7, %14 : vector<64x98xf32>
    %c0_17 = arith.constant 0 : index
    %c0_18 = arith.constant 0 : index
    %16 = vector.load %arg3[%c0_17, %c0_18] : memref<64x1xf32, #tpu.memory_space<vmem>>, vector<64x1xf32>
    %17 = vector.broadcast %16 : vector<64x1xf32> to vector<64x98xf32>
    %18 = arith.addf %15, %17 : vector<64x98xf32>
    %cst_19 = arith.constant 0.000000e+00 : f32
    %19 = vector.broadcast %cst_19 : f32 to vector<64x98xf32>
    %20 = arith.maximumf %18, %19 : vector<64x98xf32>
    %c0_20 = arith.constant 0 : index
    %c0_21 = arith.constant 0 : index
    %c0_22 = arith.constant 0 : index
    %21 = vector.load %arg4[%c0_20, %c0_21, %c0_22] : memref<1x64x98xf32, #tpu.memory_space<vmem>>, vector<1x64x98xf32>
    %22 = vector.shape_cast %21 : vector<1x64x98xf32> to vector<64x98xf32>
    %23 = vector.shape_cast %20 : vector<64x98xf32> to vector<1x64x98xf32>
    tpu.vector_store %arg4[%c0_20, %c0_21, %c0_22], %23 {strides = array<i32>} : memref<1x64x98xf32, #tpu.memory_space<vmem>>, vector<1x64x98xf32>,
    return
  }
  func.func @transform_0(%arg0: i32) -> (i32, i32, i32, i32) {
    %c0_i32 = arith.constant 0 : i32
    %c0_i32_0 = arith.constant 0 : i32
    %c0_i32_1 = arith.constant 0 : i32
    %c0_i32_2 = arith.constant 0 : i32
    return %arg0, %c0_i32, %c0_i32_0, %c0_i32_1 : i32, i32, i32, i32
  }
  func.func @transform_1(%arg0: i32) -> (i32, i32) {
    %c0_i32 = arith.constant 0 : i32
    %c0_i32_0 = arith.constant 0 : i32
    %c0_i32_1 = arith.constant 0 : i32
    return %c0_i32, %c0_i32_0 : i32, i32
  }
  func.func @transform_2(%arg0: i32) -> (i32, i32) {
    %c0_i32 = arith.constant 0 : i32
    %c0_i32_0 = arith.constant 0 : i32
    %c0_i32_1 = arith.constant 0 : i32
    return %c0_i32, %c0_i32_0 : i32, i32
  }
  func.func @transform_3(%arg0: i32) -> (i32, i32, i32) {
    %c0_i32 = arith.constant 0 : i32
    %c0_i32_0 = arith.constant 0 : i32
    %c0_i32_1 = arith.constant 0 : i32
    return %arg0, %c0_i32, %c0_i32_0 : i32, i32, i32
  }
}

module attributes {stable_mosaic.version = 11 : i64} {
  func.func @_fc_head_kernel(%arg0: i32, %arg1: memref<2x3136xf32, #tpu.memory_space<vmem>>, %arg2: memref<3136x128xbf16, #tpu.memory_space<vmem>>, %arg3: memref<1x128xf32, #tpu.memory_space<vmem>>, %arg4: memref<128x128xbf16, #tpu.memory_space<vmem>>, %arg5: memref<1x128xf32, #tpu.memory_space<vmem>>, %arg6: memref<2x128xf32, #tpu.memory_space<vmem>>) attributes {dimension_semantics = [#tpu.dimension_semantics<parallel>], iteration_bounds = array<i64: 1>, scalar_prefetch = 0 : i64, scratch_operands = 0 : i64, tpu.core_type = #tpu.core_type<tc>, window_params = [{transform_indices = @transform_0, window_bounds = array<i64: 2, 3136>}, {pipeline_mode = #tpu.pipeline_mode<synchronous>, transform_indices = @transform_1, window_bounds = array<i64: 3136, 128>}, {pipeline_mode = #tpu.pipeline_mode<synchronous>, transform_indices = @transform_2, window_bounds = array<i64: 1, 128>}, {pipeline_mode = #tpu.pipeline_mode<synchronous>, transform_indices = @transform_3, window_bounds = array<i64: 128, 128>}, {pipeline_mode = #tpu.pipeline_mode<synchronous>, transform_indices = @transform_4, window_bounds = array<i64: 1, 128>}, {transform_indices = @transform_5, window_bounds = array<i64: 2, 128>}]} {
    %c0 = arith.constant 0 : index
    %c0_0 = arith.constant 0 : index
    %0 = vector.load %arg1[%c0, %c0_0] : memref<2x3136xf32, #tpu.memory_space<vmem>>, vector<2x3136xf32>
    %1 = arith.truncf %0 : vector<2x3136xf32> to vector<2x3136xbf16>
    %c0_1 = arith.constant 0 : index
    %c0_2 = arith.constant 0 : index
    %2 = vector.load %arg2[%c0_1, %c0_2] : memref<3136x128xbf16, #tpu.memory_space<vmem>>, vector<3136x128xbf16>
    %cst = arith.constant dense<0.000000e+00> : vector<2x128xf32>
    %3 = tpu.matmul %1, %2, %cst {dimension_numbers = #tpu.dot_dimension_numbers<[1], [0], [0], [1], [0, 0, 1, 1], [], []>} : vector<2x3136xbf16>, vector<3136x128xbf16>, vector<2x128xf32> -> vector<2x128xf32>
    %c0_3 = arith.constant 0 : index
    %c0_4 = arith.constant 0 : index
    %4 = vector.load %arg3[%c0_3, %c0_4] : memref<1x128xf32, #tpu.memory_space<vmem>>, vector<1x128xf32>
    %5 = vector.broadcast %4 : vector<1x128xf32> to vector<2x128xf32>
    %6 = arith.addf %3, %5 : vector<2x128xf32>
    %cst_5 = arith.constant 0.000000e+00 : f32
    %7 = vector.broadcast %cst_5 : f32 to vector<2x128xf32>
    %8 = arith.maximumf %6, %7 : vector<2x128xf32>
    %9 = arith.truncf %8 : vector<2x128xf32> to vector<2x128xbf16>
    %c0_6 = arith.constant 0 : index
    %c0_7 = arith.constant 0 : index
    %10 = vector.load %arg4[%c0_6, %c0_7] : memref<128x128xbf16, #tpu.memory_space<vmem>>, vector<128x128xbf16>
    %cst_8 = arith.constant dense<0.000000e+00> : vector<2x128xf32>
    %11 = tpu.matmul %9, %10, %cst_8 {dimension_numbers = #tpu.dot_dimension_numbers<[1], [0], [0], [1], [0, 0, 1, 1], [], []>} : vector<2x128xbf16>, vector<128x128xbf16>, vector<2x128xf32> -> vector<2x128xf32>
    %c0_9 = arith.constant 0 : index
    %c0_10 = arith.constant 0 : index
    %12 = vector.load %arg5[%c0_9, %c0_10] : memref<1x128xf32, #tpu.memory_space<vmem>>, vector<1x128xf32>
    %13 = vector.broadcast %12 : vector<1x128xf32> to vector<2x128xf32>
    %14 = arith.addf %11, %13 : vector<2x128xf32>
    %c0_11 = arith.constant 0 : index
    %c0_12 = arith.constant 0 : index
    %15 = vector.load %arg6[%c0_11, %c0_12] : memref<2x128xf32, #tpu.memory_space<vmem>>, vector<2x128xf32>
    tpu.vector_store %arg6[%c0_11, %c0_12], %14 {strides = array<i32>} : memref<2x128xf32, #tpu.memory_space<vmem>>, vector<2x128xf32>,
    return
  }
  func.func @transform_0(%arg0: i32) -> (i32, i32) {
    %c0_i32 = arith.constant 0 : i32
    %c0_i32_0 = arith.constant 0 : i32
    return %arg0, %c0_i32 : i32, i32
  }
  func.func @transform_1(%arg0: i32) -> (i32, i32) {
    %c0_i32 = arith.constant 0 : i32
    %c0_i32_0 = arith.constant 0 : i32
    %c0_i32_1 = arith.constant 0 : i32
    return %c0_i32, %c0_i32_0 : i32, i32
  }
  func.func @transform_2(%arg0: i32) -> (i32, i32) {
    %c0_i32 = arith.constant 0 : i32
    %c0_i32_0 = arith.constant 0 : i32
    %c0_i32_1 = arith.constant 0 : i32
    return %c0_i32, %c0_i32_0 : i32, i32
  }
  func.func @transform_3(%arg0: i32) -> (i32, i32) {
    %c0_i32 = arith.constant 0 : i32
    %c0_i32_0 = arith.constant 0 : i32
    %c0_i32_1 = arith.constant 0 : i32
    return %c0_i32, %c0_i32_0 : i32, i32
  }
  func.func @transform_4(%arg0: i32) -> (i32, i32) {
    %c0_i32 = arith.constant 0 : i32
    %c0_i32_0 = arith.constant 0 : i32
    %c0_i32_1 = arith.constant 0 : i32
    return %c0_i32, %c0_i32_0 : i32, i32
  }
  func.func @transform_5(%arg0: i32) -> (i32, i32) {
    %c0_i32 = arith.constant 0 : i32
    %c0_i32_0 = arith.constant 0 : i32
    return %arg0, %c0_i32 : i32, i32
  }
}

</mosaic_0001>

<bundles_post_ra>
// kernel: cnn_forward.3
= control target key start
LH: loop header
LB: loop body
LE: loop exit
PB: predicated region body
PF: predicated region fallthrough
CT: control target
= control target key end

     0   :  { %v759_v1 = vmov 0   ;;  %vm53_vm0 = vcmask 130048   ;;  %vm666_vm1 = vcmask 64512   ;;  %s1092_s0 = inlined_call_operand.vmem [shape: bf16[1,4,16,392], index: 0, kind: input, shape index: {}]   ;;  %s1093_s1 = inlined_call_operand.vmem [shape: bf16[32,16], index: 1, kind: input, shape index: {}]   ;;  %s1094_s2 = inlined_call_operand.vmem [shape: f32[32,1], index: 2, kind: input, shape index: {}]   ;;  %s1095_s3 = inlined_call_operand.vmem [shape: f32[1,32,392], index: 3, kind: output, shape index: {}]  }
   0x1   :  { %v733_v0 = vld [vmem:[%s1092_s0 + $0x4] ss:$16 sps:$4 sm:$0xff]   ;;  %92 = vmatprep.mubr.bf16.mxu0 %v759_v1  ;;  %145 = vmatprep.mubr.bf16.mxu1 %v759_v1  ;;  %v735_v2 = vld [vmem:[%s1092_s0 + $0xc] ss:$16 sps:$4 sm:$0xff]   ;;  %v737_v3 = vld [vmem:[%s1092_s0] ss:$16 sps:$4 sm:$0xff]  }
   0x2   :  { %731 = vset.pattern.permute.xlu0 %v759_v1  ;;  %732 = vset.pattern.permute.xlu1 %v759_v1  ;;  %v738_v4 = vld [vmem:[%s1092_s0 + $0x8] ss:$16 sps:$4 sm:$0xff]   ;;  %v799_v5 = vld [vmem:[%s1093_s1] sm:$0xff]   ;;  %v745_v9 = vld [vmem:[%s1092_s0 + $0x2c] ss:$16 sps:$4 sm:$0xff]  }
   0x3   :  { %60 = vmatprep.subr.bf16.mxu0 %v733_v0  ;;  %113 = vmatprep.subr.bf16.mxu1 %v735_v2  ;;  %v740_v6 = vld [vmem:[%s1092_s0 + $0x20] ss:$16 sps:$4 sm:$0xff]   ;;  %v742_v7 = vld [vmem:[%s1092_s0 + $0x24] ss:$16 sps:$4 sm:$0xff]   ;;  %v743_v8 = vld [vmem:[%s1092_s0 + $0x28] ss:$16 sps:$4 sm:$0xff]  }
   0x4   :  { %61 = vmatpush1.bf16.msra.mxu0 %v737_v3  ;;  %114 = vmatpush1.bf16.msra.mxu1 %v738_v4  ;;  %v749_v10 = vld [vmem:[%s1092_s0 + $0x44] ss:$16 sps:$4 sm:$0xff]   ;;  %v752_v11 = vld [vmem:[%s1092_s0 + $0x4c] ss:$16 sps:$4 sm:$0xff]   ;;  %v747_v17 = vld [vmem:[%s1092_s0 + $0x40] ss:$16 sps:$4 sm:$0xff]  }
   0x5   :  { %191 = vmatprep.subr.bf16.mxu0 %v742_v7  ;;  %244 = vmatprep.subr.bf16.mxu1 %v745_v9  ;;  %v746_v12 = vld [vmem:[%s1093_s1 + $0x8] sm:$0xff]   ;;  %v607_v13 = vld [vmem:[%s1094_s2] sm:$0xff]  ;;  %v609_v14 = vld [vmem:[%s1094_s2 + $0x10] sm:$0xff] }
   0x6   :  { %613 = vperm.xlu0 %731, %v607_v13   ;;  %v608_v15 = vld [vmem:[%s1094_s2 + $0x8] sm:$0xff]  ;;  %623 = vperm.xlu1 %732, %v609_v14   ;;  %v610_v16 = vld [vmem:[%s1094_s2 + $0x18] sm:$0xff]  ;;  %v755_v19 = vld [vmem:[%s1092_s0 + $0x64] ss:$16 sps:$4 sm:$0xff]  }
   0x7   :  { %690 = vmatmul.mubr.msk.bf16.vlgmr.msra.gmra.mrb[0].mxu0 %vm53_vm0, %v799_v5  ;;  %692 = vmatmul.mubr.msk.bf16.vlgmr.msra.gmra.mrb[0].mxu1 %vm53_vm0, %v799_v5  ;;  %v750_v18 = vld [vmem:[%s1092_s0 + $0x48] ss:$16 sps:$4 sm:$0xff]   ;;  %v758_v20 = vld [vmem:[%s1092_s0 + $0x6c] ss:$16 sps:$4 sm:$0xff]   ;;  %v753_v21 = vld [vmem:[%s1092_s0 + $0x60] ss:$16 sps:$4 sm:$0xff]  }
   0x8   :  { %192 = vmatpush1.bf16.msra.mxu0 %v740_v6  ;;  %245 = vmatpush1.bf16.msra.mxu1 %v743_v8  ;;  %v756_v22 = vld [vmem:[%s1092_s0 + $0x68] ss:$16 sps:$4 sm:$0xff]  }
   0x9   :  { %102 = vmatprep.mubr.bf16.mxu0 %v759_v1  ;;  %155 = vmatprep.mubr.bf16.mxu1 %v759_v1 }
   0xa   :  { %338 = vmatprep.subr.bf16.mxu0 %v749_v10  ;;  %391 = vmatprep.subr.bf16.mxu1 %v752_v11 }
   0xb   :  { %618 = vperm.xlu0 %731, %v608_v15   ;;  %628 = vperm.xlu1 %732, %v610_v16  }
   0xf   :  { %691 = vmatmul.mubr.msk.bf16.gmra.mrb[4].mxu0 %vm53_vm0, %v746_v12  ;;  %693 = vmatmul.mubr.msk.bf16.gmra.mrb[4].mxu1 %vm53_vm0, %v746_v12 }
  0x10   :  { %223 = vmatprep.mubr.bf16.mxu0 %v759_v1  ;;  %276 = vmatprep.mubr.bf16.mxu1 %v759_v1 }
  0x17   :  { %702 = vmatmul.mubr.msk.bf16.vlgmr.msra.gmra.mrb[8].mxu0 %vm53_vm0, %v799_v5  ;;  %704 = vmatmul.mubr.msk.bf16.vlgmr.msra.gmra.mrb[8].mxu1 %vm53_vm0, %v799_v5 }
  0x18   :  { %339 = vmatpush1.bf16.msra.mxu0 %v747_v17  ;;  %392 = vmatpush1.bf16.msra.mxu1 %v750_v18 }
  0x19   :  { %233 = vmatprep.mubr.bf16.mxu0 %v759_v1  ;;  %286 = vmatprep.mubr.bf16.mxu1 %v759_v1 }
  0x1a   :  { %469 = vmatprep.subr.bf16.mxu0 %v755_v19  ;;  %522 = vmatprep.subr.bf16.mxu1 %v758_v20 }
  0x1f   :  { %703 = vmatmul.mubr.msk.bf16.gmra.mrb[12].mxu0 %vm53_vm0, %v746_v12  ;;  %705 = vmatmul.mubr.msk.bf16.gmra.mrb[12].mxu1 %vm53_vm0, %v746_v12 }
  0x20   :  { %370 = vmatprep.mubr.bf16.mxu0 %v759_v1  ;;  %423 = vmatprep.mubr.bf16.mxu1 %v759_v1 }
  0x27   :  { %714 = vmatmul.mubr.msk.bf16.vlgmr.msra.gmra.mrb[16].mxu0 %vm53_vm0, %v799_v5  ;;  %716 = vmatmul.mubr.msk.bf16.vlgmr.msra.gmra.mrb[16].mxu1 %vm53_vm0, %v799_v5 }
  0x28   :  { %470 = vmatpush1.bf16.msra.mxu0 %v753_v21  ;;  %523 = vmatpush1.bf16.msra.mxu1 %v756_v22 }
  0x29   :  { %380 = vmatprep.mubr.bf16.mxu0 %v759_v1  ;;  %433 = vmatprep.mubr.bf16.mxu1 %v759_v1 }
  0x2f   :  { %715 = vmatmul.mubr.msk.bf16.gmra.mrb[20].mxu0 %vm53_vm0, %v746_v12  ;;  %717 = vmatmul.mubr.msk.bf16.gmra.mrb[20].mxu1 %vm53_vm0, %v746_v12 }
  0x30   :  { %501 = vmatprep.mubr.bf16.mxu0 %v759_v1  ;;  %554 = vmatprep.mubr.bf16.mxu1 %v759_v1 }
  0x37   :  { %726 = vmatmul.mubr.msk.bf16.vlgmr.msra.gmra.mrb[24].mxu0 %vm53_vm0, %v799_v5  ;;  %728 = vmatmul.mubr.msk.bf16.vlgmr.msra.gmra.mrb[24].mxu1 %vm53_vm0, %v799_v5 }
  0x38   :  { %511 = vmatprep.mubr.bf16.mxu0 %v759_v1  ;;  %564 = vmatprep.mubr.bf16.mxu1 %v759_v1 }
  0x3f   :  { %727 = vmatmul.mubr.msk.bf16.gmra.mrb[28].mxu0 %vm53_vm0, %v746_v12  ;;  %729 = vmatmul.mubr.msk.bf16.gmra.mrb[28].mxu1 %vm53_vm0, %v746_v12 }
  0xda   :  { %v890_v23 = vpop.f32.mrb[0].mxu0  ;;  %v892_v24 = vpop.f32.mrb[0].mxu1 }
  0xdb   :  { %v894_v25 = vpop.f32.mrb[1].mxu0  ;;  %v896_v26 = vpop.f32.mrb[1].mxu1 }
  0xdc   :  { %v898_v27 = vpop.f32.mrb[2].mxu0  ;;  %v900_v28 = vpop.f32.mrb[2].mxu1 }
  0xdd   :  { %v902_v29 = vpop.f32.mrb[3].mxu0  ;;  %v904_v30 = vpop.f32.mrb[3].mxu1 }
  0xe2   :  { %v906_v31 = vpop.f32.mrb[4].mxu0  ;;  %v908_v32 = vpop.f32.mrb[4].mxu1 }
  0xe3   :  { %v910_v33 = vpop.f32.mrb[5].mxu0  ;;  %v912_v34 = vpop.f32.mrb[5].mxu1 }
  0xe4   :  { %v914_v35 = vpop.f32.mrb[6].mxu0  ;;  %v916_v36 = vpop.f32.mrb[6].mxu1 }
  0xe5   :  { %v918_v37 = vpop.f32.mrb[7].mxu0  ;;  %v920_v38 = vpop.f32.mrb[7].mxu1 }
  0xe6   :  { %1098 = vst [vmem:[#allocation2_spill] sm:$0xff] %v920_v38 }
  0xea   :  { %v225_v39 = vpop.f32.mrb[8].mxu0  ;;  %v278_v40 = vpop.f32.mrb[8].mxu1 }
  0xeb   :  { %v297_v41 = vmax.f32 %v890_v23, %v225_v39  ;;  %v299_v42 = vmax.f32 %v892_v24, %v278_v40  ;;  %v924_v43 = vpop.f32.mrb[9].mxu0  ;;  %v926_v44 = vpop.f32.mrb[9].mxu1 }
  0xec   :  { %v298_v45 = vmax.f32 %v894_v25, %v924_v43  ;;  %v300_v46 = vmax.f32 %v896_v26, %v926_v44  ;;  %v932_v47 = vpop.f32.mrb[10].mxu0  ;;  %v934_v48 = vpop.f32.mrb[10].mxu1 }
  0xed   :  { %v940_v51 = vpop.f32.mrb[11].mxu0  ;;  %v942_v52 = vpop.f32.mrb[11].mxu1 }
  0xee   :  { %v614_v23 = vpop.permute.xlu0 %613 }
  0xf2   :  { %v948_v55 = vpop.f32.mrb[12].mxu0  ;;  %v950_v56 = vpop.f32.mrb[12].mxu1 }
  0xf3   :  { %v956_v59 = vpop.f32.mrb[13].mxu0  ;;  %v958_v60 = vpop.f32.mrb[13].mxu1 }
  0xf4   :  { %v964_v63 = vpop.f32.mrb[14].mxu0  ;;  %v966_v0 = vpop.f32.mrb[14].mxu1 }
  0xf5   :  { %v972_v3 = vpop.f32.mrb[15].mxu0  ;;  %v974_v4 = vpop.f32.mrb[15].mxu1 }
  0xf6   :  { %1099 = vst [vmem:[#allocation3_spill] sm:$0xff] %v974_v4  ;;  %v619_v38 = vpop.permute.xlu0 %618 }
  0xfa   :  { %v372_v7 = vpop.f32.mrb[16].mxu0  ;;  %v425_v8 = vpop.f32.mrb[16].mxu1 }
  0xfb   :  { %v374_v9 = vpop.f32.mrb[17].mxu0  ;;  %v427_v10 = vpop.f32.mrb[17].mxu1 }
  0xfc   :  { %v376_v11 = vpop.f32.mrb[18].mxu0  ;;  %v429_v12 = vpop.f32.mrb[18].mxu1 }
  0xfd   :  { %v378_v13 = vpop.f32.mrb[19].mxu0  ;;  %v431_v14 = vpop.f32.mrb[19].mxu1 }
 0x102   :  { %v980_v15 = vpop.f32.mrb[20].mxu0  ;;  %v982_v16 = vpop.f32.mrb[20].mxu1 }
 0x103   :  { %v984_v17 = vpop.f32.mrb[21].mxu0  ;;  %v986_v18 = vpop.f32.mrb[21].mxu1 }
 0x104   :  { %v988_v19 = vpop.f32.mrb[22].mxu0  ;;  %v990_v20 = vpop.f32.mrb[22].mxu1 }
 0x105   :  { %v992_v21 = vpop.f32.mrb[23].mxu0  ;;  %v994_v22 = vpop.f32.mrb[23].mxu1 }
 0x10a   :  { %v503_v24 = vpop.f32.mrb[24].mxu0  ;;  %v556_v25 = vpop.f32.mrb[24].mxu1 }
 0x10b   :  { %v575_v26 = vmax.f32 %v372_v7, %v503_v24  ;;  %v577_v39 = vmax.f32 %v425_v8, %v556_v25  ;;  %v505_v40 = vpop.f32.mrb[25].mxu0  ;;  %v558_v43 = vpop.f32.mrb[25].mxu1  ;;  %v1101_v24 = vmax.f32 %v900_v28, %v934_v48 }
 0x10c   :  { %v576_v44 = vmax.f32 %v374_v9, %v505_v40  ;;  %v578_v6 = vmax.f32 %v427_v10, %v558_v43  ;;  %v507_v5 = vpop.f32.mrb[26].mxu0  ;;  %v560_v2 = vpop.f32.mrb[26].mxu1  ;;  %v1100_v9 = vmax.f32 %v898_v27, %v932_v47 }
 0x10d   :  { %v591_v1 = vmax.f32 %v297_v41, %v575_v26  ;;  %v593_v62 = vmax.f32 %v299_v42, %v577_v39  ;;  %v579_v61 = vmax.f32 %v376_v11, %v507_v5  ;;  %v581_v58 = vmax.f32 %v429_v12, %v560_v2  ;;  %v509_v57 = vpop.f32.mrb[27].mxu0  ;;  %v562_v54 = vpop.f32.mrb[27].mxu1 }
 0x10e   :  { %v592_v53 = vmax.f32 %v298_v45, %v576_v44  ;;  %v594_v50 = vmax.f32 %v300_v46, %v578_v6  ;;  %v580_v49 = vmax.f32 %v378_v13, %v509_v57  ;;  %v582_v4 = vmax.f32 %v431_v14, %v562_v54  ;;  %v624_v27 = vpop.permute.xlu1 %623 }
 0x10f   :  { %v631_v7 = vadd.f32 %v614_v23, %v591_v1  ;;  %v633_v8 = vadd.f32 %v614_v23, %v593_v62  ;;  %v595_v10 = vmax.f32 %v1100_v9, %v579_v61  ;;  %v597_v41 = vmax.f32 %v1101_v24, %v581_v58 }
 0x110   :  { %v632_v42 = vadd.f32 %v614_v23, %v592_v53  ;;  %v634_v5 = vadd.f32 %v614_v23, %v594_v50  ;;  %v1102_v2 = vmax.f32 %v902_v29, %v940_v51  ;;  %v1103_v46 = vmax.f32 %v904_v30, %v942_v52 }
 0x111   :  { %v647_v57 = vmax.f32 %v631_v7, 0.0  ;;  %v649_v62 = vmax.f32 %v633_v8, 0.0  ;;  %v635_v1 = vadd.f32 %v619_v38, %v595_v10  ;;  %v637_v6 = vadd.f32 %v619_v38, %v597_v41  ;;  %v1111_v10 = vld [vmem:[#allocation2_spill] sm:$0xff] }
 0x112   :  { %v596_v45 = vmax.f32 %v1102_v2, %v580_v49  ;;  %v598_v54 = vmax.f32 %v1103_v46, %v582_v4  ;;  %v648_v47 = vmax.f32 %v632_v42, 0.0  ;;  %v650_v61 = vmax.f32 %v634_v5, 0.0  ;;  %v513_v48 = vpop.f32.mrb[28].mxu0  ;;  %v566_v53 = vpop.f32.mrb[28].mxu1 }
 0x113   :  { %663 = vst [vmem:[%s1095_s3] sm:$0xff] %v647_v57  ;;  %665 = vst [vmem:[%s1095_s3 + $0x10] sm:$0xff] %v649_v62  ;;  %v651_v29 = vmax.f32 %v635_v1, 0.0  ;;  %v653_v30 = vmax.f32 %v637_v6, 0.0  ;;  %v583_v49 = vmax.f32 %v980_v15, %v513_v48  ;;  %v585_v50 = vmax.f32 %v982_v16, %v566_v53  ;;  %v515_v51 = vpop.f32.mrb[29].mxu0  ;;  %v568_v52 = vpop.f32.mrb[29].mxu1 }
 0x114   :  { %v636_v11 = vadd.f32 %v619_v38, %v596_v45  ;;  %v638_v28 = vadd.f32 %v619_v38, %v598_v54  ;;  %664 = vst [vmem:[%s1095_s3 + $0x8] sm:$0xff] %v648_v47  ;;  %667 = vst.msk [vmem:[%s1095_s3 + $0x18] sm:$0xff] %vm666_vm1, %v650_v61  ;;  %v584_v4 = vmax.f32 %v984_v17, %v515_v51  ;;  %v517_v13 = vpop.f32.mrb[30].mxu0  ;;  %v570_v14 = vpop.f32.mrb[30].mxu1 }
 0x115   :  { %v586_v12 = vmax.f32 %v986_v18, %v568_v52  ;;  %668 = vst [vmem:[%s1095_s3 + $0x20] sm:$0xff] %v651_v29  ;;  %670 = vst [vmem:[%s1095_s3 + $0x30] sm:$0xff] %v653_v30  ;;  %v1104_v15 = vmax.f32 %v906_v31, %v948_v55  ;;  %v1105_v23 = vmax.f32 %v908_v32, %v950_v56  ;;  %v519_v26 = vpop.f32.mrb[31].mxu0  ;;  %v572_v39 = vpop.f32.mrb[31].mxu1 }
 0x116   :  { %v652_v38 = vmax.f32 %v636_v11, 0.0  ;;  %v654_v58 = vmax.f32 %v638_v28, 0.0  ;;  %v587_v18 = vmax.f32 %v988_v19, %v517_v13  ;;  %v589_v25 = vmax.f32 %v990_v20, %v570_v14  ;;  %v629_v41 = vpop.permute.xlu1 %628 }
 0x117   :  { %v599_v16 = vmax.f32 %v1104_v15, %v583_v49  ;;  %v601_v17 = vmax.f32 %v1105_v23, %v585_v50  ;;  %v1106_v31 = vmax.f32 %v910_v33, %v956_v59  ;;  %v1107_v55 = vmax.f32 %v912_v34, %v958_v60 }
 0x118   :  { %669 = vst [vmem:[%s1095_s3 + $0x28] sm:$0xff] %v652_v38  ;;  %671 = vst.msk [vmem:[%s1095_s3 + $0x38] sm:$0xff] %vm666_vm1, %v654_v58  ;;  %v588_v19 = vmax.f32 %v992_v21, %v519_v26  ;;  %v590_v20 = vmax.f32 %v994_v22, %v572_v39  ;;  %v1108_v44 = vmax.f32 %v914_v35, %v964_v63  ;;  %v1112_v21 = vld [vmem:[#allocation3_spill] sm:$0xff] }
 0x119   :  { %v600_v32 = vmax.f32 %v1106_v31, %v584_v4  ;;  %v602_v56 = vmax.f32 %v1107_v55, %v586_v12  ;;  %v639_v40 = vadd.f32 %v624_v27, %v599_v16  ;;  %v641_v43 = vadd.f32 %v624_v27, %v601_v17 }
 0x11a   :  { %v603_v7 = vmax.f32 %v1108_v44, %v587_v18  ;;  %v1109_v8 = vmax.f32 %v916_v36, %v966_v0  ;;  %v1110_v34 = vmax.f32 %v918_v37, %v972_v3  ;;  %v1113_v24 = vmax.f32 %v1111_v10, %v1112_v21 }
 0x11b   :  { %v640_v33 = vadd.f32 %v624_v27, %v600_v32  ;;  %v642_v59 = vadd.f32 %v624_v27, %v602_v56  ;;  %v655_v42 = vmax.f32 %v639_v40, 0.0  ;;  %v657_v5 = vmax.f32 %v641_v43, 0.0 }
 0x11c   :  { %v605_v9 = vmax.f32 %v1109_v8, %v589_v25  ;;  %v604_v60 = vmax.f32 %v1110_v34, %v588_v19  ;;  %v606_v22 = vmax.f32 %v1113_v24, %v590_v20  ;;  %v643_v2 = vadd.f32 %v629_v41, %v603_v7 }
 0x11d   :  { %v656_v63 = vmax.f32 %v640_v33, 0.0  ;;  %v658_v45 = vmax.f32 %v642_v59, 0.0  ;;  %672 = vst [vmem:[%s1095_s3 + $0x40] sm:$0xff] %v655_v42  ;;  %674 = vst [vmem:[%s1095_s3 + $0x50] sm:$0xff] %v657_v5 }
 0x11e   :  { %v645_v35 = vadd.f32 %v629_v41, %v605_v9  ;;  %v644_v46 = vadd.f32 %v629_v41, %v604_v60  ;;  %v646_v36 = vadd.f32 %v629_v41, %v606_v22  ;;  %v659_v37 = vmax.f32 %v643_v2, 0.0 }
 0x11f   :  { %673 = vst [vmem:[%s1095_s3 + $0x48] sm:$0xff] %v656_v63  ;;  %675 = vst.msk [vmem:[%s1095_s3 + $0x58] sm:$0xff] %vm666_vm1, %v658_v45 }
 0x120   :  { %v661_v0 = vmax.f32 %v645_v35, 0.0  ;;  %v660_v3 = vmax.f32 %v644_v46, 0.0  ;;  %v662_v54 = vmax.f32 %v646_v36, 0.0  ;;  %676 = vst [vmem:[%s1095_s3 + $0x60] sm:$0xff] %v659_v37 }
 0x122   :  { %678 = vst [vmem:[%s1095_s3 + $0x70] sm:$0xff] %v661_v0  ;;  %677 = vst [vmem:[%s1095_s3 + $0x68] sm:$0xff] %v660_v3 }
 0x123   :  { %679 = vst.msk [vmem:[%s1095_s3 + $0x78] sm:$0xff] %vm666_vm1, %v662_v54 }

// kernel: cnn_forward.4
= control target key start
LH: loop header
LB: loop body
LE: loop exit
PB: predicated region body
PF: predicated region fallthrough
CT: control target
= control target key end

     0   :  { %v1835_v1 = vmov 0   ;;  %vm235_vm0 = vcmask 261120   ;;  %vm1291_vm1 = vcmask 801792   ;;  %s2348_s0 = inlined_call_operand.vmem [shape: bf16[1,4,288,98], index: 0, kind: input, shape index: {}]   ;;  %s2349_s1 = inlined_call_operand.vmem [shape: bf16[64,288], index: 1, kind: input, shape index: {}]   ;;  %s2350_s2 = inlined_call_operand.vmem [shape: f32[64,1], index: 2, kind: input, shape index: {}]   ;;  %s2351_s3 = inlined_call_operand.vmem [shape: f32[1,64,98], index: 3, kind: output, shape index: {}]  }
   0x1   :  { %v1747_v0 = vld [vmem:[%s2348_s0 + $0x40] sm:$0xff]   ;;  %1746 = vset.pattern.permute.xlu1 %v1835_v1  ;;  %1745 = vset.pattern.permute.xlu0 %v1835_v1  ;;  %v1748_v2 = vld [vmem:[%s2348_s0 + $0xd0] sm:$0xff]   ;;  %v1751_v5 = vld [vmem:[%s2348_s0 + $0x48] sm:$0xff]  }
   0x2   :  { %1512 = vmatprep.subr.bf16.mxu0 %v1747_v0  ;;  %v1749_v3 = vld [vmem:[%s2348_s0] sm:$0xff]   ;;  %1558 = vmatprep.subr.bf16.mxu1 %v1748_v2  ;;  %v1750_v4 = vld [vmem:[%s2348_s0 + $0x90] sm:$0xff]   ;;  %v1752_v6 = vld [vmem:[%s2348_s0 + $0xd8] sm:$0xff]  }
   0x3   :  { %1513 = vmatpush3.bf16.msra.mxu0 %v1749_v3  ;;  %1559 = vmatpush3.bf16.msra.mxu1 %v1750_v4  ;;  %v1753_v7 = vld [vmem:[%s2348_s0 + $0x8] sm:$0xff]   ;;  %v1754_v8 = vld [vmem:[%s2348_s0 + $0x98] sm:$0xff]   ;;  %v1755_v9 = vld [vmem:[%s2348_s0 + $0x50] sm:$0xff]  }
   0x4   :  { %1514 = vmatprep.subr.bf16.mxu0 %v1751_v5  ;;  %1560 = vmatprep.subr.bf16.mxu1 %v1752_v6  ;;  %v1756_v10 = vld [vmem:[%s2348_s0 + $0xe0] sm:$0xff]   ;;  %v1757_v11 = vld [vmem:[%s2348_s0 + $0x10] sm:$0xff]   ;;  %v1759_v13 = vld [vmem:[%s2348_s0 + $0x58] sm:$0xff]  }
   0x5   :  { %v1758_v12 = vld [vmem:[%s2348_s0 + $0xa0] sm:$0xff]   ;;  %v1760_v14 = vld [vmem:[%s2348_s0 + $0xe8] sm:$0xff]   ;;  %v1761_v15 = vld [vmem:[%s2348_s0 + $0x18] sm:$0xff]  }
   0x6   :  { %v1762_v16 = vld [vmem:[%s2348_s0 + $0xa8] sm:$0xff]   ;;  %v1763_v17 = vld [vmem:[%s2348_s0 + $0x60] sm:$0xff]   ;;  %v1764_v18 = vld [vmem:[%s2348_s0 + $0xf0] sm:$0xff]  }
   0x7   :  { %1515 = vmatpush3.bf16.msra.mxu0 %v1753_v7  ;;  %1561 = vmatpush3.bf16.msra.mxu1 %v1754_v8  ;;  %v1765_v19 = vld [vmem:[%s2348_s0 + $0x20] sm:$0xff]   ;;  %v1766_v20 = vld [vmem:[%s2348_s0 + $0xb0] sm:$0xff]   ;;  %v1767_v21 = vld [vmem:[%s2348_s0 + $0x68] sm:$0xff]  }
   0x8   :  { %1516 = vmatprep.subr.bf16.mxu0 %v1755_v9  ;;  %1562 = vmatprep.subr.bf16.mxu1 %v1756_v10  ;;  %v1768_v22 = vld [vmem:[%s2348_s0 + $0xf8] sm:$0xff]   ;;  %v1769_v23 = vld [vmem:[%s2348_s0 + $0x28] sm:$0xff]   ;;  %v1771_v25 = vld [vmem:[%s2348_s0 + $0x70] sm:$0xff]  }
   0x9   :  { %v1770_v24 = vld [vmem:[%s2348_s0 + $0xb8] sm:$0xff]   ;;  %v1772_v26 = vld [vmem:[%s2348_s0 + $0x100] sm:$0xff]   ;;  %v1773_v27 = vld [vmem:[%s2348_s0 + $0x30] sm:$0xff]  }
   0xa   :  { %v1774_v28 = vld [vmem:[%s2348_s0 + $0xc0] sm:$0xff]   ;;  %v1775_v29 = vld [vmem:[%s2348_s0 + $0x78] sm:$0xff]   ;;  %v1776_v30 = vld [vmem:[%s2348_s0 + $0x108] sm:$0xff]  }
   0xb   :  { %1517 = vmatpush3.bf16.msra.mxu0 %v1757_v11  ;;  %1563 = vmatpush3.bf16.msra.mxu1 %v1758_v12  ;;  %v1777_v31 = vld [vmem:[%s2348_s0 + $0x38] sm:$0xff]   ;;  %v1778_v32 = vld [vmem:[%s2348_s0 + $0xc8] sm:$0xff]   ;;  %v1955_v33 = vld [vmem:[%s2349_s1 + $0x4] ss:$12 sps:$4 sm:$0xff]  }
   0xc   :  { %1518 = vmatprep.subr.bf16.mxu0 %v1759_v13  ;;  %1564 = vmatprep.subr.bf16.mxu1 %v1760_v14  ;;  %v1960_v34 = vld [vmem:[%s2349_s1] ss:$12 sps:$4 sm:$0xff]   ;;  %v1984_v40 = vld [vmem:[%s2349_s1 + $0x1c] ss:$12 sps:$4 sm:$0xff]   ;;  %v1989_v41 = vld [vmem:[%s2349_s1 + $0x18] ss:$12 sps:$4 sm:$0xff]  }
   0xd   :  { %280 = vmatprep.mubr.bf16.mxu0 %v1955_v33  ;;  %555 = vmatprep.mubr.bf16.mxu1 %v1955_v33  ;;  %v1782_v35 = vld [vmem:[%s2348_s0 + $0x160] sm:$0xff]   ;;  %v1785_v38 = vld [vmem:[%s2348_s0 + $0x168] sm:$0xff]   ;;  %v1790_v42 = vld [vmem:[%s2348_s0 + $0x170] sm:$0xff]  }
   0xe   :  { %v1783_v36 = vld [vmem:[%s2348_s0 + $0x120] sm:$0xff]   ;;  %v1786_v39 = vld [vmem:[%s2348_s0 + $0x128] sm:$0xff]   ;;  %v1791_v43 = vld [vmem:[%s2348_s0 + $0x130] sm:$0xff]  }
   0xf   :  { %1519 = vmatpush3.bf16.msra.mxu0 %v1761_v15  ;;  %1565 = vmatpush3.bf16.msra.mxu1 %v1762_v16  ;;  %v1784_v37 = vld [vmem:[%s2348_s0 + $0x80] sm:$0xff]   ;;  %v1792_v44 = vld [vmem:[%s2348_s0 + $0x178] sm:$0xff]   ;;  %v1799_v49 = vld [vmem:[%s2348_s0 + $0x88] sm:$0xff]  }
  0x10   :  { %1520 = vmatprep.subr.bf16.mxu0 %v1763_v17  ;;  %1566 = vmatprep.subr.bf16.mxu1 %v1764_v18  ;;  %v1793_v45 = vld [vmem:[%s2348_s0 + $0x138] sm:$0xff]   ;;  %v2010_v46 = vld [vmem:[%s2349_s1 + $0x34] ss:$12 sps:$4 sm:$0xff]   ;;  %v1800_v51 = vld [vmem:[%s2348_s0 + $0x188] sm:$0xff]  }
  0x11   :  { %v2015_v47 = vld [vmem:[%s2349_s1 + $0x30] ss:$12 sps:$4 sm:$0xff]   ;;  %v1797_v48 = vld [vmem:[%s2348_s0 + $0x180] sm:$0xff]   ;;  %v2034_v52 = vld [vmem:[%s2349_s1 + $0x4c] ss:$12 sps:$4 sm:$0xff]  }
  0x12   :  { %v1798_v50 = vld [vmem:[%s2348_s0 + $0x140] sm:$0xff]   ;;  %v1801_v53 = vld [vmem:[%s2348_s0 + $0x148] sm:$0xff]   ;;  %v1805_v54 = vld [vmem:[%s2348_s0 + $0x190] sm:$0xff]  }
  0x13   :  { %1521 = vmatpush3.bf16.msra.mxu0 %v1765_v19  ;;  %1567 = vmatpush3.bf16.msra.mxu1 %v1766_v20  ;;  %v2049_v55 = vld [vmem:[%s2349_s1 + $0x48] ss:$12 sps:$4 sm:$0xff]   ;;  %v1807_v58 = vld [vmem:[%s2348_s0 + $0x198] sm:$0xff]   ;;  %v2079_v62 = vld [vmem:[%s2349_s1 + $0x20] ss:$12 sps:$4 sm:$0xff]  }
  0x14   :  { %1522 = vmatprep.subr.bf16.mxu0 %v1767_v21  ;;  %1568 = vmatprep.subr.bf16.mxu1 %v1768_v22  ;;  %v2054_v56 = vld [vmem:[%s2349_s1 + $0x8] ss:$12 sps:$4 sm:$0xff]   ;;  %v1808_v60 = vld [vmem:[%s2348_s0 + $0x158] sm:$0xff]   ;;  %v1818_v4 = vld [vmem:[%s2348_s0 + $0x200] sm:$0xff]  }
  0x15   :  { %v1806_v57 = vld [vmem:[%s2348_s0 + $0x150] sm:$0xff]   ;;  %v2087_v0 = vld [vmem:[%s2349_s1 + $0x38] ss:$12 sps:$4 sm:$0xff]   ;;  %v1821_v8 = vld [vmem:[%s2348_s0 + $0x208] sm:$0xff]  }
  0x16   :  { %v1813_v59 = vld [vmem:[%s2348_s0 + $0x110] sm:$0xff]   ;;  %v1814_v1 = vld [vmem:[%s2348_s0 + $0x1f8] sm:$0xff]   ;;  %v1825_v6 = vld [vmem:[%s2348_s0 + $0x1a0] sm:$0xff]  }
  0x17   :  { %1523 = vmatpush3.bf16.msra.mxu0 %v1769_v23  ;;  %1569 = vmatpush3.bf16.msra.mxu1 %v1770_v24  ;;  %v1811_v61 = vld [vmem:[%s2348_s0 + $0x1f0] sm:$0xff]   ;;  %v1820_v2 = vld [vmem:[%s2348_s0 + $0x118] sm:$0xff]   ;;  %v1819_v7 = vld [vmem:[%s2348_s0 + $0x1c0] sm:$0xff]  }
  0x18   :  { %1524 = vmatprep.subr.bf16.mxu0 %v1771_v25  ;;  %1570 = vmatprep.subr.bf16.mxu1 %v1772_v26  ;;  %v1812_v63 = vld [vmem:[%s2348_s0 + $0x1b0] sm:$0xff]   ;;  %v1815_v3 = vld [vmem:[%s2348_s0 + $0x1b8] sm:$0xff]   ;;  %v1822_v9 = vld [vmem:[%s2348_s0 + $0x1c8] sm:$0xff]  }
  0x19   :  { %v2110_v5 = vld [vmem:[%s2349_s1 + $0x50] ss:$12 sps:$4 sm:$0xff]   ;;  %v1227_v13 = vld [vmem:[%s2350_s2] sm:$0xff]  ;;  %v1830_v15 = vld [vmem:[%s2348_s0 + $0x1a8] sm:$0xff]  }
  0x1a   :  { %v1823_v10 = vld [vmem:[%s2348_s0 + $0x210] sm:$0xff]   ;;  %v1826_v14 = vld [vmem:[%s2348_s0 + $0x218] sm:$0xff]   ;;  %1237 = vperm.xlu0 %1745, %v1227_v13   ;;  %v1228_v19 = vld [vmem:[%s2350_s2 + $0x8] sm:$0xff] }
  0x1b   :  { %1525 = vmatpush3.bf16.msra.mxu0 %v1773_v27  ;;  %1571 = vmatpush3.bf16.msra.mxu1 %v1774_v28  ;;  %v1824_v11 = vld [vmem:[%s2348_s0 + $0x1d0] sm:$0xff]   ;;  %v1230_v16 = vld [vmem:[%s2350_s2 + $0x18] sm:$0xff]  ;;  %v1828_v20 = vld [vmem:[%s2348_s0 + $0x220] sm:$0xff]  }
  0x1c   :  { %1526 = vmatprep.subr.bf16.mxu0 %v1775_v29  ;;  %1572 = vmatprep.subr.bf16.mxu1 %v1776_v30  ;;  %v1229_v12 = vld [vmem:[%s2350_s2 + $0x10] sm:$0xff]  ;;  %v1827_v17 = vld [vmem:[%s2348_s0 + $0x1d8] sm:$0xff]   ;;  %v1232_v21 = vld [vmem:[%s2350_s2 + $0x28] sm:$0xff] }
  0x1d   :  { %1247 = vperm.xlu1 %1746, %v1229_v12   ;;  %v1833_v18 = vld [vmem:[%s2348_s0 + $0x230] sm:$0xff]   ;;  %v1829_v22 = vld [vmem:[%s2348_s0 + $0x1e0] sm:$0xff]   ;;  %v1831_v23 = vld [vmem:[%s2348_s0 + $0x228] sm:$0xff]  }
  0x1e   :  { %1242 = vperm.xlu0 %1745, %v1228_v19   ;;  %v1231_v24 = vld [vmem:[%s2350_s2 + $0x20] sm:$0xff]  ;;  %v1234_v25 = vld [vmem:[%s2350_s2 + $0x38] sm:$0xff]  ;;  %v1832_v26 = vld [vmem:[%s2348_s0 + $0x1e8] sm:$0xff]  }
  0x1f   :  { %1527 = vmatpush3.bf16.msra.mxu0 %v1777_v31  ;;  %1573 = vmatpush3.bf16.msra.mxu1 %v1778_v32  ;;  %v1233_v27 = vld [vmem:[%s2350_s2 + $0x30] sm:$0xff]  ;;  %v1834_v28 = vld [vmem:[%s2348_s0 + $0x238] sm:$0xff]  }
  0x20   :  { %1604 = vmatprep.subr.bf16.mxu1 %v1782_v35  ;;  %1696 = vmatprep.subr.bf16.mxu0 %v1784_v37 }
  0x21   :  { %1252 = vperm.xlu1 %1746, %v1230_v16  }
  0x22   :  { %281 = vmatmul.mubr.bf16.vlgmr.msra.gmra.mrb[0].mxu0 %v1960_v34  ;;  %556 = vmatmul.mubr.bf16.vlgmr.msra.gmra.mrb[0].mxu1 %v1960_v34 }
  0x23   :  { %1605 = vmatpush3.bf16.msra.mxu1 %v1783_v36  ;;  %1697 = vmatpush3.bf16.msra.mxu0 %v1784_v37 }
  0x24   :  { %1606 = vmatprep.subr.bf16.mxu1 %v1785_v38  ;;  %288 = vmatprep.mubr.bf16.mxu0 %v1984_v40 }
  0x25   :  { %563 = vmatprep.mubr.bf16.mxu1 %v1984_v40  ;;  %1698 = vmatprep.subr.bf16.mxu0 %v1799_v49 }
  0x26   :  { %1262 = vperm.xlu1 %1746, %v1232_v21   ;;  %1257 = vperm.xlu0 %1745, %v1231_v24  }
  0x27   :  { %1607 = vmatpush3.bf16.msra.mxu1 %v1786_v39  ;;  %1699 = vmatpush3.bf16.msra.mxu0 %v1799_v49 }
  0x28   :  { %1608 = vmatprep.subr.bf16.mxu1 %v1790_v42  ;;  %1708 = vmatprep.subr.bf16.mxu0 %v1813_v59 }
  0x2a   :  { %289 = vmatmul.mubr.bf16.gmra.mrb[4].mxu0 %v1989_v41  ;;  %564 = vmatmul.mubr.bf16.gmra.mrb[4].mxu1 %v1989_v41 }
  0x2b   :  { %1609 = vmatpush3.bf16.msra.mxu1 %v1791_v43  ;;  %296 = vmatprep.mubr.bf16.mxu0 %v2010_v46 }
  0x2c   :  { %1610 = vmatprep.subr.bf16.mxu1 %v1792_v44  ;;  %571 = vmatprep.mubr.bf16.mxu1 %v2010_v46 }
  0x2d   :  { %1272 = vperm.xlu1 %1746, %v1234_v25   ;;  %1267 = vperm.xlu0 %1745, %v1233_v27  }
  0x2f   :  { %1611 = vmatpush3.bf16.msra.mxu1 %v1793_v45 }
  0x30   :  { %1612 = vmatprep.subr.bf16.mxu1 %v1797_v48 }
  0x32   :  { %297 = vmatmul.mubr.bf16.gmra.mrb[8].mxu0 %v2015_v47  ;;  %572 = vmatmul.mubr.bf16.gmra.mrb[8].mxu1 %v2015_v47 }
  0x33   :  { %304 = vmatprep.mubr.bf16.mxu0 %v2034_v52  ;;  %1613 = vmatpush3.bf16.msra.mxu1 %v1798_v50 }
  0x34   :  { %579 = vmatprep.mubr.bf16.mxu1 %v2034_v52  ;;  %1614 = vmatprep.subr.bf16.mxu1 %v1800_v51 }
  0x37   :  { %1615 = vmatpush3.bf16.msra.mxu1 %v1801_v53 }
  0x38   :  { %1616 = vmatprep.subr.bf16.mxu1 %v1805_v54 }
  0x3a   :  { %305 = vmatmul.mubr.bf16.gmra.mrb[12].mxu0 %v2049_v55  ;;  %580 = vmatmul.mubr.bf16.gmra.mrb[12].mxu1 %v2049_v55 }
  0x3b   :  { %1700 = vmatprep.mubr.msk.bf16.mxu0 %vm235_vm0, %v2054_v56  ;;  %1617 = vmatpush3.bf16.msra.mxu1 %v1806_v57 }
  0x3c   :  { %838 = vmatprep.mubr.bf16.mxu1 %v1955_v33  ;;  %1618 = vmatprep.subr.bf16.mxu1 %v1807_v58 }
  0x3f   :  { %1619 = vmatpush3.bf16.msra.mxu1 %v1808_v60 }
  0x40   :  { %1650 = vmatprep.subr.bf16.mxu1 %v1811_v61 }
  0x42   :  { %1701 = vmatmul.mubr.msk.bf16.vlgmr.msra.gmra.mrb[16].mxu0 %vm235_vm0, %v2079_v62  ;;  %839 = vmatmul.mubr.bf16.vlgmr.msra.gmra.mrb[16].mxu1 %v1960_v34 }
  0x43   :  { %1709 = vmatpush3.bf16.msra.mxu0 %v1813_v59  ;;  %1651 = vmatpush3.bf16.msra.mxu1 %v1812_v63 }
  0x44   :  { %1704 = vmatprep.mubr.msk.bf16.mxu0 %vm235_vm0, %v2087_v0  ;;  %1652 = vmatprep.subr.bf16.mxu1 %v1814_v1 }
  0x45   :  { %846 = vmatprep.mubr.bf16.mxu1 %v1984_v40  ;;  %1710 = vmatprep.subr.bf16.mxu0 %v1820_v2 }
  0x47   :  { %1711 = vmatpush3.bf16.msra.mxu0 %v1820_v2  ;;  %1653 = vmatpush3.bf16.msra.mxu1 %v1815_v3 }
  0x48   :  { %1654 = vmatprep.subr.bf16.mxu1 %v1818_v4  ;;  %1720 = vmatprep.subr.bf16.mxu0 %v1825_v6 }
  0x4a   :  { %1705 = vmatmul.mubr.msk.bf16.gmra.mrb[20].mxu0 %vm235_vm0, %v2110_v5  ;;  %847 = vmatmul.mubr.bf16.gmra.mrb[20].mxu1 %v1989_v41 }
  0x4b   :  { %1712 = vmatprep.mubr.msk.bf16.mxu0 %vm235_vm0, %v2054_v56  ;;  %1655 = vmatpush3.bf16.msra.mxu1 %v1819_v7 }
  0x4c   :  { %854 = vmatprep.mubr.bf16.mxu1 %v2010_v46  ;;  %1656 = vmatprep.subr.bf16.mxu1 %v1821_v8 }
  0x4f   :  { %1657 = vmatpush3.bf16.msra.mxu1 %v1822_v9 }
  0x50   :  { %1658 = vmatprep.subr.bf16.mxu1 %v1823_v10 }
  0x52   :  { %1713 = vmatmul.mubr.msk.bf16.vlgmr.msra.gmra.mrb[24].mxu0 %vm235_vm0, %v2079_v62  ;;  %855 = vmatmul.mubr.bf16.gmra.mrb[24].mxu1 %v2015_v47 }
  0x53   :  { %1721 = vmatpush3.bf16.msra.mxu0 %v1825_v6  ;;  %1659 = vmatpush3.bf16.msra.mxu1 %v1824_v11 }
  0x54   :  { %1716 = vmatprep.mubr.msk.bf16.mxu0 %vm235_vm0, %v2087_v0  ;;  %1660 = vmatprep.subr.bf16.mxu1 %v1826_v14 }
  0x55   :  { %862 = vmatprep.mubr.bf16.mxu1 %v2034_v52  ;;  %1722 = vmatprep.subr.bf16.mxu0 %v1830_v15 }
  0x57   :  { %1723 = vmatpush3.bf16.msra.mxu0 %v1830_v15  ;;  %1661 = vmatpush3.bf16.msra.mxu1 %v1827_v17 }
  0x58   :  { %1732 = vmatprep.subr.bf16.mxu0 %v1833_v18  ;;  %1662 = vmatprep.subr.bf16.mxu1 %v1828_v20 }
  0x5a   :  { %1717 = vmatmul.mubr.msk.bf16.gmra.mrb[28].mxu0 %vm235_vm0, %v2110_v5  ;;  %863 = vmatmul.mubr.bf16.gmra.mrb[28].mxu1 %v2049_v55 }
  0x5b   :  { %1724 = vmatprep.mubr.msk.bf16.mxu0 %vm235_vm0, %v2054_v56  ;;  %1663 = vmatpush3.bf16.msra.mxu1 %v1829_v22 }
  0x5c   :  { %1113 = vmatprep.mubr.bf16.mxu1 %v1955_v33  ;;  %1664 = vmatprep.subr.bf16.mxu1 %v1831_v23 }
  0x5f   :  { %1665 = vmatpush3.bf16.msra.mxu1 %v1832_v26 }
  0x62   :  { %1725 = vmatmul.mubr.msk.bf16.vlgmr.msra.gmra.mrb[32].mxu0 %vm235_vm0, %v2079_v62  ;;  %1114 = vmatmul.mubr.bf16.vlgmr.msra.gmra.mrb[32].mxu1 %v1960_v34 }
  0x63   :  { %1733 = vmatpush3.bf16.msra.mxu0 %v1833_v18  ;;  %1728 = vmatprep.mubr.msk.bf16.mxu0 %vm235_vm0, %v2087_v0 }
  0x64   :  { %1121 = vmatprep.mubr.bf16.mxu1 %v1984_v40  ;;  %1734 = vmatprep.subr.bf16.mxu0 %v1834_v28 }
  0x67   :  { %1735 = vmatpush3.bf16.msra.mxu0 %v1834_v28 }
  0x6a   :  { %1729 = vmatmul.mubr.msk.bf16.gmra.mrb[36].mxu0 %vm235_vm0, %v2110_v5  ;;  %1122 = vmatmul.mubr.bf16.gmra.mrb[36].mxu1 %v1989_v41 }
  0x6b   :  { %1736 = vmatprep.mubr.msk.bf16.mxu0 %vm235_vm0, %v2054_v56  ;;  %1129 = vmatprep.mubr.bf16.mxu1 %v2010_v46 }
  0x72   :  { %1737 = vmatmul.mubr.msk.bf16.vlgmr.msra.gmra.mrb[40].mxu0 %vm235_vm0, %v2079_v62  ;;  %1130 = vmatmul.mubr.bf16.gmra.mrb[40].mxu1 %v2015_v47 }
  0x73   :  { %1740 = vmatprep.mubr.msk.bf16.mxu0 %vm235_vm0, %v2087_v0  ;;  %1137 = vmatprep.mubr.bf16.mxu1 %v2034_v52 }
  0x7a   :  { %1741 = vmatmul.mubr.msk.bf16.gmra.mrb[44].mxu0 %vm235_vm0, %v2110_v5  ;;  %1138 = vmatmul.mubr.bf16.gmra.mrb[44].mxu1 %v2049_v55 }
  0xf5   :  { %v1528_v29 = vpop.f32.mrb[0].mxu0  ;;  %v1574_v30 = vpop.f32.mrb[0].mxu1 }
  0xf6   :  { %v1529_v31 = vpop.f32.mrb[1].mxu0  ;;  %v1575_v33 = vpop.f32.mrb[1].mxu1 }
  0xf7   :  { %v1530_v32 = vadd.f32 %v1529_v31, %v1528_v29  ;;  %v1531_v34 = vpop.f32.mrb[2].mxu0  ;;  %v2220_v35 = vadd.f32 %v1575_v33, %v1574_v30  ;;  %v1577_v36 = vpop.f32.mrb[2].mxu1 }
  0xf8   :  { %v1532_v37 = vpop.f32.mrb[3].mxu0  ;;  %v1578_v39 = vpop.f32.mrb[3].mxu1 }
  0xf9   :  { %v1533_v38 = vadd.f32 %v1532_v37, %v1531_v34  ;;  %v2222_v40 = vadd.f32 %v1578_v39, %v1577_v36 }
  0xfd   :  { %v1534_v41 = vpop.f32.mrb[4].mxu0  ;;  %v1580_v42 = vpop.f32.mrb[4].mxu1 }
  0xfe   :  { %v1535_v43 = vpop.f32.mrb[5].mxu0  ;;  %v1581_v45 = vpop.f32.mrb[5].mxu1 }
  0xff   :  { %v1536_v44 = vadd.f32 %v1535_v43, %v1534_v41  ;;  %v1537_v46 = vpop.f32.mrb[6].mxu0  ;;  %v1582_v47 = vadd.f32 %v1581_v45, %v1580_v42  ;;  %v1583_v48 = vpop.f32.mrb[6].mxu1 }
 0x100   :  { %v1538_v49 = vpop.f32.mrb[7].mxu0  ;;  %v1584_v51 = vpop.f32.mrb[7].mxu1 }
 0x101   :  { %v1539_v50 = vadd.f32 %v1538_v49, %v1537_v46  ;;  %v1585_v52 = vadd.f32 %v1584_v51, %v1583_v48 }
 0x105   :  { %v1540_v53 = vpop.f32.mrb[8].mxu0  ;;  %v1586_v54 = vpop.f32.mrb[8].mxu1 }
 0x106   :  { %v1541_v55 = vpop.f32.mrb[9].mxu0  ;;  %v1587_v57 = vpop.f32.mrb[9].mxu1 }
 0x107   :  { %v1542_v56 = vadd.f32 %v1541_v55, %v1540_v53  ;;  %v1543_v58 = vpop.f32.mrb[10].mxu0  ;;  %v2224_v59 = vadd.f32 %v1587_v57, %v1586_v54  ;;  %v1589_v60 = vpop.f32.mrb[10].mxu1 }
 0x108   :  { %v1544_v61 = vpop.f32.mrb[11].mxu0  ;;  %v1590_v63 = vpop.f32.mrb[11].mxu1 }
 0x109   :  { %v1545_v62 = vadd.f32 %v1544_v61, %v1543_v58  ;;  %v2226_v0 = vadd.f32 %v1590_v63, %v1589_v60 }
 0x10d   :  { %v1546_v1 = vpop.f32.mrb[12].mxu0  ;;  %v1592_v2 = vpop.f32.mrb[12].mxu1 }
 0x10e   :  { %v1547_v3 = vpop.f32.mrb[13].mxu0  ;;  %v1593_v5 = vpop.f32.mrb[13].mxu1 }
 0x10f   :  { %v1548_v4 = vadd.f32 %v1547_v3, %v1546_v1  ;;  %v1549_v6 = vpop.f32.mrb[14].mxu0  ;;  %v1594_v7 = vadd.f32 %v1593_v5, %v1592_v2  ;;  %v1595_v8 = vpop.f32.mrb[14].mxu1 }
 0x110   :  { %v1550_v9 = vpop.f32.mrb[15].mxu0  ;;  %v1596_v11 = vpop.f32.mrb[15].mxu1 }
 0x111   :  { %v1551_v10 = vadd.f32 %v1550_v9, %v1549_v6  ;;  %v1597_v12 = vadd.f32 %v1596_v11, %v1595_v8 }
 0x115   :  { %v1702_v13 = vpop.f32.mrb[16].mxu0  ;;  %v1620_v15 = vpop.f32.mrb[16].mxu1 }
 0x116   :  { %v2228_v14 = vadd.f32 %v1702_v13, %v1536_v44  ;;  %v347_v16 = vpop.f32.mrb[17].mxu0  ;;  %v1621_v18 = vpop.f32.mrb[17].mxu1 }
 0x117   :  { %v2230_v17 = vadd.f32 %v1530_v32, %v347_v16  ;;  %v1703_v19 = vpop.f32.mrb[18].mxu0  ;;  %v1622_v20 = vadd.f32 %v1621_v18, %v1620_v15  ;;  %v1623_v22 = vpop.f32.mrb[18].mxu1 }
 0x118   :  { %v2232_v21 = vadd.f32 %v1703_v19, %v1539_v50  ;;  %v350_v23 = vpop.f32.mrb[19].mxu0  ;;  %v1624_v25 = vpop.f32.mrb[19].mxu1 }
 0x119   :  { %v2234_v24 = vadd.f32 %v1533_v38, %v350_v23  ;;  %v1625_v26 = vadd.f32 %v1624_v25, %v1623_v22 }
 0x11d   :  { %v1706_v27 = vpop.f32.mrb[20].mxu0  ;;  %v1626_v29 = vpop.f32.mrb[20].mxu1 }
 0x11e   :  { %v2236_v28 = vadd.f32 %v1706_v27, %v1548_v4  ;;  %v363_v30 = vpop.f32.mrb[21].mxu0  ;;  %v1627_v32 = vpop.f32.mrb[21].mxu1 }
 0x11f   :  { %v2238_v31 = vadd.f32 %v1542_v56, %v363_v30  ;;  %v1707_v33 = vpop.f32.mrb[22].mxu0  ;;  %v1628_v34 = vadd.f32 %v1627_v32, %v1626_v29  ;;  %v1629_v37 = vpop.f32.mrb[22].mxu1 }
 0x120   :  { %v2240_v36 = vadd.f32 %v1707_v33, %v1551_v10  ;;  %v366_v39 = vpop.f32.mrb[23].mxu0  ;;  %v1630_v38 = vpop.f32.mrb[23].mxu1 }
 0x121   :  { %v2242_v41 = vadd.f32 %v1545_v62, %v366_v39  ;;  %v1631_v42 = vadd.f32 %v1630_v38, %v1629_v37 }
 0x125   :  { %v1714_v43 = vpop.f32.mrb[24].mxu0  ;;  %v1632_v45 = vpop.f32.mrb[24].mxu1 }
 0x126   :  { %v2244_v44 = vadd.f32 %v1714_v43, %v1582_v47  ;;  %v622_v46 = vpop.f32.mrb[25].mxu0  ;;  %v1633_v49 = vpop.f32.mrb[25].mxu1 }
 0x127   :  { %v2247_v48 = vadd.f32 %v2220_v35, %v622_v46  ;;  %v1715_v50 = vpop.f32.mrb[26].mxu0  ;;  %v1634_v53 = vadd.f32 %v1633_v49, %v1632_v45  ;;  %v1635_v55 = vpop.f32.mrb[26].mxu1 }
 0x128   :  { %v655_v51 = vmax.f32 %v2228_v14, %v2244_v44  ;;  %v2251_v54 = vadd.f32 %v1715_v50, %v1585_v52  ;;  %v625_v56 = vpop.f32.mrb[27].mxu0  ;;  %v1636_v58 = vpop.f32.mrb[27].mxu1 }
 0x129   :  { %v653_v57 = vmax.f32 %v2230_v17, %v2247_v48  ;;  %v2256_v47 = vadd.f32 %v2222_v40, %v625_v56  ;;  %v1637_v60 = vadd.f32 %v1636_v58, %v1635_v55 }
 0x12a   :  { %v656_v35 = vmax.f32 %v2232_v21, %v2251_v54 }
 0x12b   :  { %v654_v61 = vmax.f32 %v2234_v24, %v2256_v47 }
 0x12d   :  { %v1718_v62 = vpop.f32.mrb[28].mxu0  ;;  %v1638_v52 = vpop.f32.mrb[28].mxu1 }
 0x12e   :  { %v2262_v63 = vadd.f32 %v1718_v62, %v1594_v7  ;;  %v638_v1 = vpop.f32.mrb[29].mxu0  ;;  %v1639_v3 = vpop.f32.mrb[29].mxu1 }
 0x12f   :  { %v2265_v2 = vadd.f32 %v2224_v59, %v638_v1  ;;  %v1719_v4 = vpop.f32.mrb[30].mxu0  ;;  %v1640_v5 = vadd.f32 %v1639_v3, %v1638_v52  ;;  %v1641_v8 = vpop.f32.mrb[30].mxu1 }
 0x130   :  { %v659_v40 = vmax.f32 %v2236_v28, %v2262_v63  ;;  %v2269_v6 = vadd.f32 %v1719_v4, %v1597_v12  ;;  %v641_v9 = vpop.f32.mrb[31].mxu0  ;;  %v1642_v11 = vpop.f32.mrb[31].mxu1 }
 0x131   :  { %v657_v10 = vmax.f32 %v2238_v31, %v2265_v2  ;;  %v2274_v7 = vadd.f32 %v2226_v0, %v641_v9  ;;  %v1643_v13 = vadd.f32 %v1642_v11, %v1641_v8  ;;  %v1248_v62 = vpop.permute.xlu1 %1247  ;;  %v1238_v52 = vpop.permute.xlu0 %1237 }
 0x132   :  { %v660_v59 = vmax.f32 %v2240_v36, %v2269_v6 }
 0x133   :  { %v658_v15 = vmax.f32 %v2242_v41, %v2274_v7 }
 0x135   :  { %v1726_v16 = vpop.f32.mrb[32].mxu0  ;;  %v1666_v12 = vpop.f32.mrb[32].mxu1 }
 0x136   :  { %v914_v18 = vadd.f32 %v1726_v16, %v1628_v34  ;;  %v905_v19 = vpop.f32.mrb[33].mxu0  ;;  %v1667_v23 = vpop.f32.mrb[33].mxu1 }
 0x137   :  { %v906_v22 = vadd.f32 %v1622_v20, %v905_v19  ;;  %v1727_v25 = vpop.f32.mrb[34].mxu0  ;;  %v1668_v27 = vadd.f32 %v1667_v23, %v1666_v12  ;;  %v1669_v30 = vpop.f32.mrb[34].mxu1 }
 0x138   :  { %v917_v29 = vadd.f32 %v1727_v25, %v1631_v42  ;;  %v908_v0 = vpop.f32.mrb[35].mxu0  ;;  %v1670_v33 = vpop.f32.mrb[35].mxu1 }
 0x139   :  { %v909_v32 = vadd.f32 %v1625_v26, %v908_v0  ;;  %v1671_v37 = vadd.f32 %v1670_v33, %v1669_v30 }
 0x13d   :  { %v1730_v39 = vpop.f32.mrb[36].mxu0  ;;  %v1672_v43 = vpop.f32.mrb[36].mxu1 }
 0x13e   :  { %v2280_v38 = vadd.f32 %v1730_v39, %v1640_v5  ;;  %v921_v45 = vpop.f32.mrb[37].mxu0  ;;  %v1673_v34 = vpop.f32.mrb[37].mxu1 }
 0x13f   :  { %v2282_v46 = vadd.f32 %v1634_v53, %v921_v45  ;;  %v1731_v49 = vpop.f32.mrb[38].mxu0  ;;  %v1674_v50 = vadd.f32 %v1673_v34, %v1672_v43  ;;  %v1675_v55 = vpop.f32.mrb[38].mxu1 }
 0x140   :  { %v2284_v20 = vadd.f32 %v1731_v49, %v1643_v13  ;;  %v924_v56 = vpop.f32.mrb[39].mxu0  ;;  %v1676_v58 = vpop.f32.mrb[39].mxu1 }
 0x141   :  { %v2286_v42 = vadd.f32 %v1637_v60, %v924_v56  ;;  %v1677_v26 = vadd.f32 %v1676_v58, %v1675_v55  ;;  %v1243_v39 = vpop.permute.xlu0 %1242 }
 0x145   :  { %v1738_v1 = vpop.f32.mrb[40].mxu0  ;;  %v1678_v3 = vpop.f32.mrb[40].mxu1 }
 0x146   :  { %v1189_v4 = vadd.f32 %v1738_v1, %v1674_v50  ;;  %v1180_v5 = vpop.f32.mrb[41].mxu0  ;;  %v1679_v8 = vpop.f32.mrb[41].mxu1 }
 0x147   :  { %v1181_v53 = vadd.f32 %v1668_v27, %v1180_v5  ;;  %v1739_v9 = vpop.f32.mrb[42].mxu0  ;;  %v1680_v16 = vadd.f32 %v1679_v8, %v1678_v3  ;;  %v1681_v12 = vpop.f32.mrb[42].mxu1 }
 0x148   :  { %v1213_v11 = vmax.f32 %v914_v18, %v1189_v4  ;;  %v1192_v13 = vadd.f32 %v1739_v9, %v1677_v26  ;;  %v1183_v19 = vpop.f32.mrb[43].mxu0  ;;  %v1682_v25 = vpop.f32.mrb[43].mxu1 }
 0x149   :  { %v1211_v23 = vmax.f32 %v906_v22, %v1181_v53  ;;  %v1184_v60 = vadd.f32 %v1671_v37, %v1183_v19  ;;  %v1683_v33 = vadd.f32 %v1682_v25, %v1681_v12  ;;  %v1253_v22 = vpop.permute.xlu1 %1252 }
 0x14a   :  { %v1221_v30 = vmax.f32 %v655_v51, %v1213_v11  ;;  %v1214_v0 = vmax.f32 %v917_v29, %v1192_v13 }
 0x14b   :  { %v1219_v27 = vmax.f32 %v653_v57, %v1211_v23  ;;  %v1212_v43 = vmax.f32 %v909_v32, %v1184_v60 }
 0x14c   :  { %v1277_v18 = vadd.f32 %v1248_v62, %v1221_v30  ;;  %v1222_v45 = vmax.f32 %v656_v35, %v1214_v0 }
 0x14d   :  { %v1275_v37 = vadd.f32 %v1238_v52, %v1219_v27  ;;  %v1220_v14 = vmax.f32 %v654_v61, %v1212_v43  ;;  %v1742_v44 = vpop.f32.mrb[44].mxu0  ;;  %v1684_v34 = vpop.f32.mrb[44].mxu1 }
 0x14e   :  { %v1285_v51 = vmax.f32 %v1277_v18, 0.0  ;;  %v1278_v29 = vadd.f32 %v1253_v22, %v1222_v45  ;;  %v1196_v49 = vpop.f32.mrb[45].mxu0  ;;  %v1685_v57 = vpop.f32.mrb[45].mxu1 }
 0x14f   :  { %v1283_v17 = vmax.f32 %v1275_v37, 0.0  ;;  %v1276_v48 = vadd.f32 %v1243_v39, %v1220_v14  ;;  %v1197_v32 = vadd.f32 %v1680_v16, %v1196_v49  ;;  %v1743_v50 = vpop.f32.mrb[46].mxu0  ;;  %v1686_v54 = vadd.f32 %v1685_v57, %v1684_v34  ;;  %v1687_v35 = vpop.f32.mrb[46].mxu1 }
 0x150   :  { %1294 = vst.msk [vmem:[%s2351_s3 + $0x10] sm:$0xff] %vm1291_vm1, %v1285_v51  ;;  %v1286_v21 = vmax.f32 %v1278_v29, 0.0  ;;  %v1199_v24 = vpop.f32.mrb[47].mxu0  ;;  %v1258_v61 = vpop.permute.xlu0 %1257 }
 0x151   :  { %1292 = vst.msk [vmem:[%s2351_s3] sm:$0xff] %vm1291_vm1, %v1283_v17  ;;  %v1284_v47 = vmax.f32 %v1276_v48, 0.0  ;;  %v1215_v55 = vmax.f32 %v2282_v46, %v1197_v32  ;;  %v1688_v56 = vpop.f32.mrb[47].mxu1  ;;  %v1200_v58 = vadd.f32 %v1683_v33, %v1199_v24  ;;  %v1205_v26 = vadd.f32 %v1742_v44, %v1686_v54  ;;  %v1263_v52 = vpop.permute.xlu1 %1262 }
 0x152   :  { %1295 = vst.msk [vmem:[%s2351_s3 + $0x18] sm:$0xff] %vm1291_vm1, %v1286_v21  ;;  %v1689_v62 = vadd.f32 %v1688_v56, %v1687_v35 }
 0x153   :  { %1293 = vst.msk [vmem:[%s2351_s3 + $0x8] sm:$0xff] %vm1291_vm1, %v1284_v47  ;;  %v1223_v1 = vmax.f32 %v657_v10, %v1215_v55  ;;  %v1216_v46 = vmax.f32 %v2286_v42, %v1200_v58  ;;  %v1217_v3 = vmax.f32 %v2280_v38, %v1205_v26 }
 0x154   :  { %v1208_v4 = vadd.f32 %v1743_v50, %v1689_v62  ;;  %v1268_v11 = vpop.permute.xlu0 %1267 }
 0x155   :  { %v1279_v5 = vadd.f32 %v1258_v61, %v1223_v1  ;;  %v1224_v8 = vmax.f32 %v658_v15, %v1216_v46  ;;  %v1225_v53 = vmax.f32 %v659_v40, %v1217_v3  ;;  %v1273_v38 = vpop.permute.xlu1 %1272 }
 0x156   :  { %v1218_v9 = vmax.f32 %v2284_v20, %v1208_v4 }
 0x157   :  { %v1287_v16 = vmax.f32 %v1279_v5, 0.0  ;;  %v1280_v31 = vadd.f32 %v1263_v52, %v1224_v8  ;;  %v1281_v2 = vadd.f32 %v1268_v11, %v1225_v53 }
 0x158   :  { %v1226_v10 = vmax.f32 %v660_v59, %v1218_v9 }
 0x159   :  { %1296 = vst.msk [vmem:[%s2351_s3 + $0x20] sm:$0xff] %vm1291_vm1, %v1287_v16  ;;  %v1288_v41 = vmax.f32 %v1280_v31, 0.0  ;;  %v1289_v7 = vmax.f32 %v1281_v2, 0.0 }
 0x15a   :  { %v1282_v28 = vadd.f32 %v1273_v38, %v1226_v10 }
 0x15b   :  { %1297 = vst.msk [vmem:[%s2351_s3 + $0x28] sm:$0xff] %vm1291_vm1, %v1288_v41  ;;  %1298 = vst.msk [vmem:[%s2351_s3 + $0x30] sm:$0xff] %vm1291_vm1, %v1289_v7 }
 0x15c   :  { %v1290_v36 = vmax.f32 %v1282_v28, 0.0 }
 0x15e   :  { %1299 = vst.msk [vmem:[%s2351_s3 + $0x38] sm:$0xff] %vm1291_vm1, %v1290_v36 }

// kernel: cnn_forward.5
= control target key start
LH: loop header
LB: loop body
LE: loop exit
PB: predicated region body
PF: predicated region fallthrough
CT: control target
= control target key end

     0   :  { %v40_v27 = vlaneseq  ;;  %v3178_v35 = vmov 1983009808   ;;  %s3891_s0 = inlined_call_operand.vmem [shape: f32[2,3136], index: 0, kind: input, shape index: {}]   ;;  %s3892_s1 = inlined_call_operand.vmem [shape: bf16[3136,128], index: 1, kind: input, shape index: {}]   ;;  %s3893_s2 = inlined_call_operand.vmem [shape: f32[1,128], index: 2, kind: input, shape index: {}]   ;;  %s3894_s3 = inlined_call_operand.vmem [shape: bf16[128,128], index: 3, kind: input, shape index: {}]   ;;  %s3895_s4 = inlined_call_operand.vmem [shape: f32[1,128], index: 4, kind: input, shape index: {}]   ;;  %s3896_s5 = inlined_call_operand.hbm [shape: f32[2,128], index: 5, kind: output, shape index: {}]  }
   0x1   :  { %v2944_v0 = vld [vmem:[%s3892_s1 + $0x40] sm:$0xff]   ;;  %v2948_v4 = vld [vmem:[%s3892_s1 + $0x48] sm:$0xff]   ;;  %v2952_v8 = vld [vmem:[%s3892_s1 + $0x50] sm:$0xff]   ;;  %v38_v36 = vunpack.c.l.s4 %v3178_v35 }
   0x2   :  { %v2945_v1 = vld [vmem:[%s3892_s1] sm:$0xff]   ;;  %2630 = vmatprep.subr.bf16.mxu0 %v2944_v0  ;;  %v2949_v5 = vld [vmem:[%s3892_s1 + $0x8] sm:$0xff]   ;;  %v2953_v9 = vld [vmem:[%s3892_s1 + $0x10] sm:$0xff]   ;;  %v41_v32 = vshrl.u32 %v40_v27, 7 }
   0x3   :  { %v2946_v2 = vld [vmem:[%s3892_s1 + $0xc0] sm:$0xff]   ;;  %2631 = vmatpush3.bf16.msra.mxu0 %v2945_v1  ;;  %v2950_v6 = vld [vmem:[%s3892_s1 + $0xc8] sm:$0xff]   ;;  %v2954_v10 = vld [vmem:[%s3892_s1 + $0xd0] sm:$0xff]   ;;  %v39_v38 = vunpack.c.0.s8 %v38_v36 }
   0x4   :  { %v2947_v3 = vld [vmem:[%s3892_s1 + $0x80] sm:$0xff]   ;;  %2652 = vmatprep.subr.bf16.mxu1 %v2946_v2  ;;  %2632 = vmatprep.subr.bf16.mxu0 %v2948_v4  ;;  %v2951_v7 = vld [vmem:[%s3892_s1 + $0x88] sm:$0xff]   ;;  %v2955_v11 = vld [vmem:[%s3892_s1 + $0x90] sm:$0xff]  }
   0x5   :  { %2653 = vmatpush3.bf16.msra.mxu1 %v2947_v3  ;;  %v2956_v12 = vld [vmem:[%s3892_s1 + $0x58] sm:$0xff]   ;;  %v2960_v16 = vld [vmem:[%s3892_s1 + $0x60] sm:$0xff]   ;;  %v2964_v20 = vld [vmem:[%s3892_s1 + $0x68] sm:$0xff]   ;;  %v3317_v41 = vsub.s32 %v39_v38, %v41_v32 }
   0x6   :  { %2654 = vmatprep.subr.bf16.mxu1 %v2950_v6  ;;  %v2957_v13 = vld [vmem:[%s3892_s1 + $0x18] sm:$0xff]   ;;  %v2961_v17 = vld [vmem:[%s3892_s1 + $0x20] sm:$0xff]   ;;  %v2965_v21 = vld [vmem:[%s3892_s1 + $0x28] sm:$0xff]  }
   0x7   :  { %2633 = vmatpush3.bf16.msra.mxu0 %v2949_v5  ;;  %v2958_v14 = vld [vmem:[%s3892_s1 + $0xd8] sm:$0xff]   ;;  %v2962_v18 = vld [vmem:[%s3892_s1 + $0xe0] sm:$0xff]   ;;  %v2966_v22 = vld [vmem:[%s3892_s1 + $0xe8] sm:$0xff]  }
   0x8   :  { %2634 = vmatprep.subr.bf16.mxu0 %v2952_v8  ;;  %v2959_v15 = vld [vmem:[%s3892_s1 + $0x98] sm:$0xff]   ;;  %v2963_v19 = vld [vmem:[%s3892_s1 + $0xa0] sm:$0xff]   ;;  %v2967_v23 = vld [vmem:[%s3892_s1 + $0xa8] sm:$0xff]  }
   0x9   :  { %2655 = vmatpush3.bf16.msra.mxu1 %v2951_v7  ;;  %v2968_v24 = vld [vmem:[%s3892_s1 + $0x70] sm:$0xff]   ;;  %v2972_v29 = vld [vmem:[%s3892_s1 + $0x78] sm:$0xff]   ;;  %v22_v33 = vld [vmem:[%s3891_s0] sm:$0xff] }
   0xa   :  { %2656 = vmatprep.subr.bf16.mxu1 %v2954_v10  ;;  %v2969_v25 = vld [vmem:[%s3892_s1 + $0x30] sm:$0xff]   ;;  %v2973_v30 = vld [vmem:[%s3892_s1 + $0x38] sm:$0xff]   ;;  %v2976_v37 = vld [vmem:[%s3892_s1 + $0x140] sm:$0xff]   ;;  %v36_v39 = vcombine.high %v22_v33, %v22_v33  ;;  %v43_v42 = vrot.slane %v22_v33, %v3317_v41 }
   0xb   :  { %2635 = vmatpush3.bf16.msra.mxu0 %v2953_v9  ;;  %v2970_v26 = vld [vmem:[%s3892_s1 + $0xf0] sm:$0xff]   ;;  %v2974_v31 = vld [vmem:[%s3892_s1 + $0xf8] sm:$0xff]   ;;  %v2979_v40 = vld [vmem:[%s3892_s1 + $0x1c0] sm:$0xff]  }
   0xc   :  { %2636 = vmatprep.subr.bf16.mxu0 %v2956_v12  ;;  %v2971_v28 = vld [vmem:[%s3892_s1 + $0xb0] sm:$0xff]   ;;  %v2975_v34 = vld [vmem:[%s3892_s1 + $0xb8] sm:$0xff]   ;;  %v50_v43 = vrot.slane %v36_v39, %v3317_v41  ;;  %v51_v44 = vcombine.high %v43_v42, %v43_v42  ;;  %v2978_v46 = vld [vmem:[%s3892_s1 + $0x100] sm:$0xff]   ;;  %v170_v47 = vpack.c.bf16 %v43_v42, %v43_v42 }
   0xd   :  { %2657 = vmatpush3.bf16.msra.mxu1 %v2955_v11  ;;  %v2980_v49 = vld [vmem:[%s3892_s1 + $0x180] sm:$0xff]   ;;  %v2981_v52 = vld [vmem:[%s3892_s1 + $0x148] sm:$0xff]   ;;  %v2985_v56 = vld [vmem:[%s3892_s1 + $0x150] sm:$0xff]  }
   0xe   :  { %2658 = vmatprep.subr.bf16.mxu1 %v2958_v14  ;;  %v52_v45 = vcombine.high %v50_v43, %v50_v43  ;;  %v172_v48 = vpack.c.bf16 %v50_v43, %v50_v43  ;;  %v171_v50 = vpack.c.bf16 %v51_v44, %v51_v44  ;;  %v2983_v53 = vld [vmem:[%s3892_s1 + $0x1c8] sm:$0xff]   ;;  %v2987_v57 = vld [vmem:[%s3892_s1 + $0x1d0] sm:$0xff]   ;;  %v2989_v60 = vld [vmem:[%s3892_s1 + $0x158] sm:$0xff]  }
   0xf   :  { %2637 = vmatpush3.bf16.msra.mxu0 %v2957_v13  ;;  %v2982_v54 = vld [vmem:[%s3892_s1 + $0x108] sm:$0xff]   ;;  %v2986_v58 = vld [vmem:[%s3892_s1 + $0x110] sm:$0xff]   ;;  %v2991_v61 = vld [vmem:[%s3892_s1 + $0x1d8] sm:$0xff]  }
  0x10   :  { %2638 = vmatprep.subr.bf16.mxu0 %v2960_v16  ;;  %v173_v51 = vpack.c.bf16 %v52_v45, %v52_v45  ;;  %1806 = vmatprep.mubr.bf16.mxu0 %v171_v50  ;;  %v2984_v55 = vld [vmem:[%s3892_s1 + $0x188] sm:$0xff]   ;;  %v2988_v59 = vld [vmem:[%s3892_s1 + $0x190] sm:$0xff]   ;;  %v2990_v62 = vld [vmem:[%s3892_s1 + $0x118] sm:$0xff]  }
  0x11   :  { %2659 = vmatpush3.bf16.msra.mxu1 %v2959_v15  ;;  %v2992_v63 = vld [vmem:[%s3892_s1 + $0x198] sm:$0xff]   ;;  %v2993_v0 = vld [vmem:[%s3892_s1 + $0x160] sm:$0xff]   ;;  %v2997_v4 = vld [vmem:[%s3892_s1 + $0x168] sm:$0xff]  }
  0x12   :  { %2660 = vmatprep.subr.bf16.mxu1 %v2962_v18  ;;  %1846 = vmatprep.mubr.bf16.mxu1 %v173_v51  ;;  %v2995_v1 = vld [vmem:[%s3892_s1 + $0x1e0] sm:$0xff]   ;;  %v2999_v5 = vld [vmem:[%s3892_s1 + $0x1e8] sm:$0xff]   ;;  %v3001_v8 = vld [vmem:[%s3892_s1 + $0x170] sm:$0xff]  }
  0x13   :  { %2639 = vmatpush3.bf16.msra.mxu0 %v2961_v17  ;;  %v2994_v2 = vld [vmem:[%s3892_s1 + $0x120] sm:$0xff]   ;;  %v2998_v6 = vld [vmem:[%s3892_s1 + $0x128] sm:$0xff]   ;;  %v3003_v9 = vld [vmem:[%s3892_s1 + $0x1f0] sm:$0xff]  }
  0x14   :  { %2640 = vmatprep.subr.bf16.mxu0 %v2964_v20  ;;  %v2996_v3 = vld [vmem:[%s3892_s1 + $0x1a0] sm:$0xff]   ;;  %v3000_v7 = vld [vmem:[%s3892_s1 + $0x1a8] sm:$0xff]   ;;  %v3002_v11 = vld [vmem:[%s3892_s1 + $0x130] sm:$0xff]  }
  0x15   :  { %2661 = vmatpush3.bf16.msra.mxu1 %v2963_v19  ;;  %v23_v10 = vld [vmem:[%s3891_s0 + $0x8] sm:$0xff]  ;;  %v3004_v14 = vld [vmem:[%s3892_s1 + $0x1b0] sm:$0xff]   ;;  %v3005_v15 = vld [vmem:[%s3892_s1 + $0x178] sm:$0xff]  }
  0x16   :  { %2662 = vmatprep.subr.bf16.mxu1 %v2966_v22  ;;  %v60_v12 = vrot.slane %v23_v10, %v3317_v41  ;;  %v53_v13 = vcombine.high %v23_v10, %v23_v10  ;;  %v3007_v18 = vld [vmem:[%s3892_s1 + $0x1f8] sm:$0xff]   ;;  %v3015_v32 = vld [vmem:[%s3892_s1 + $0x208] sm:$0xff]   ;;  %v3020_v35 = vld [vmem:[%s3892_s1 + $0x2d0] sm:$0xff]  }
  0x17   :  { %2641 = vmatpush3.bf16.msra.mxu0 %v2965_v21  ;;  %v3006_v19 = vld [vmem:[%s3892_s1 + $0x138] sm:$0xff]   ;;  %v3017_v33 = vld [vmem:[%s3892_s1 + $0x288] sm:$0xff]   ;;  %v3019_v36 = vld [vmem:[%s3892_s1 + $0x210] sm:$0xff]  }
  0x18   :  { %2642 = vmatprep.subr.bf16.mxu0 %v2968_v24  ;;  %v68_v16 = vcombine.high %v60_v12, %v60_v12  ;;  %v67_v17 = vrot.slane %v53_v13, %v3317_v41  ;;  %v3008_v22 = vld [vmem:[%s3892_s1 + $0x1b8] sm:$0xff]   ;;  %v174_v27 = vpack.c.bf16 %v60_v12, %v60_v12  ;;  %v3026_v43 = vld [vmem:[%s3892_s1 + $0x260] sm:$0xff]   ;;  %v3033_v50 = vld [vmem:[%s3892_s1 + $0x2a8] sm:$0xff]  }
  0x19   :  { %2663 = vmatpush3.bf16.msra.mxu1 %v2967_v23  ;;  %v3009_v23 = vld [vmem:[%s3892_s1 + $0x240] sm:$0xff]   ;;  %v3022_v38 = vld [vmem:[%s3892_s1 + $0x258] sm:$0xff]   ;;  %v3034_v51 = vld [vmem:[%s3892_s1 + $0x270] sm:$0xff]  }
  0x1a   :  { %2664 = vmatprep.subr.bf16.mxu1 %v2970_v26  ;;  %v175_v20 = vpack.c.bf16 %v68_v16, %v68_v16  ;;  %v69_v21 = vcombine.high %v67_v17, %v67_v17  ;;  %v3011_v26 = vld [vmem:[%s3892_s1 + $0x200] sm:$0xff]   ;;  %v3024_v39 = vld [vmem:[%s3892_s1 + $0x2d8] sm:$0xff]   ;;  %v3049_v10 = vld [vmem:[%s3892_s1 + $0x3c8] sm:$0xff]  }
  0x1b   :  { %2643 = vmatpush3.bf16.msra.mxu0 %v2969_v25  ;;  %v3012_v25 = vld [vmem:[%s3892_s1 + $0x2c0] sm:$0xff]   ;;  %v3025_v42 = vld [vmem:[%s3892_s1 + $0x298] sm:$0xff]   ;;  %v3050_v12 = vld [vmem:[%s3892_s1 + $0x388] sm:$0xff]  }
  0x1c   :  { %2644 = vmatprep.subr.bf16.mxu0 %v2972_v29  ;;  %v177_v24 = vpack.c.bf16 %v69_v21, %v69_v21  ;;  %v3013_v29 = vld [vmem:[%s3892_s1 + $0x280] sm:$0xff]   ;;  %v3051_v13 = vld [vmem:[%s3892_s1 + $0x350] sm:$0xff]  }
  0x1d   :  { %2665 = vmatpush3.bf16.msra.mxu1 %v2971_v28  ;;  %v176_v28 = vpack.c.bf16 %v67_v17, %v67_v17  ;;  %v3028_v44 = vld [vmem:[%s3892_s1 + $0x2e0] sm:$0xff]   ;;  %v3054_v16 = vld [vmem:[%s3892_s1 + $0x390] sm:$0xff]   ;;  %v3055_v17 = vld [vmem:[%s3892_s1 + $0x358] sm:$0xff]  }
  0x1e   :  { %2666 = vmatprep.subr.bf16.mxu1 %v2974_v31  ;;  %v3016_v31 = vld [vmem:[%s3892_s1 + $0x2c8] sm:$0xff]   ;;  %v3027_v45 = vld [vmem:[%s3892_s1 + $0x220] sm:$0xff]  }
  0x1f   :  { %2645 = vmatpush3.bf16.msra.mxu0 %v2973_v30  ;;  %v3014_v30 = vld [vmem:[%s3892_s1 + $0x248] sm:$0xff]   ;;  %v3059_v21 = vld [vmem:[%s3892_s1 + $0x360] sm:$0xff]  }
  0x20   :  { %2674 = vmatprep.subr.bf16.mxu0 %v2976_v37  ;;  %v3021_v37 = vld [vmem:[%s3892_s1 + $0x290] sm:$0xff]  }
  0x21   :  { %2667 = vmatpush3.bf16.msra.mxu1 %v2975_v34  ;;  %v3018_v34 = vld [vmem:[%s3892_s1 + $0x250] sm:$0xff]  }
  0x22   :  { %2696 = vmatprep.subr.bf16.mxu1 %v2979_v40  ;;  %1807 = vmatmul.mubr.bf16.vlgmr.msra.gmra.mrb[0].mxu0 %v170_v47  ;;  %v3023_v40 = vld [vmem:[%s3892_s1 + $0x218] sm:$0xff]   ;;  %v3030_v47 = vld [vmem:[%s3892_s1 + $0x268] sm:$0xff]  }
  0x23   :  { %2675 = vmatpush3.bf16.msra.mxu0 %v2978_v46  ;;  %1886 = vmatprep.mubr.bf16.mxu0 %v175_v20  ;;  %v3029_v46 = vld [vmem:[%s3892_s1 + $0x2a0] sm:$0xff]   ;;  %v3058_v20 = vld [vmem:[%s3892_s1 + $0x398] sm:$0xff]  }
  0x24   :  { %1847 = vmatmul.mubr.bf16.vlgmr.msra.gmra.mrb[0].mxu1 %v172_v48  ;;  %2676 = vmatprep.subr.bf16.mxu0 %v2981_v52  ;;  %v3032_v48 = vld [vmem:[%s3892_s1 + $0x2e8] sm:$0xff]   ;;  %v3036_v52 = vld [vmem:[%s3892_s1 + $0x2f0] sm:$0xff]  }
  0x25   :  { %2697 = vmatpush3.bf16.msra.mxu1 %v2980_v49  ;;  %1926 = vmatprep.mubr.bf16.mxu1 %v177_v24  ;;  %v3031_v49 = vld [vmem:[%s3892_s1 + $0x228] sm:$0xff]   ;;  %v3062_v24 = vld [vmem:[%s3892_s1 + $0x3a0] sm:$0xff]  }
  0x26   :  { %2698 = vmatprep.subr.bf16.mxu1 %v2983_v53  ;;  %v24_v53 = vld [vmem:[%s3891_s0 + $0x10] sm:$0xff] }
  0x27   :  { %2677 = vmatpush3.bf16.msra.mxu0 %v2982_v54  ;;  %v3035_v54 = vld [vmem:[%s3892_s1 + $0x230] sm:$0xff]  }
  0x28   :  { %2678 = vmatprep.subr.bf16.mxu0 %v2985_v56  ;;  %v70_v56 = vcombine.high %v24_v53, %v24_v53 }
  0x29   :  { %2699 = vmatpush3.bf16.msra.mxu1 %v2984_v55  ;;  %v77_v55 = vrot.slane %v24_v53, %v3317_v41  ;;  %v3082_v53 = vld [vmem:[%s3892_s1 + $0x4c8] sm:$0xff]  }
  0x2a   :  { %2700 = vmatprep.subr.bf16.mxu1 %v2987_v57  ;;  %v3037_v57 = vld [vmem:[%s3892_s1 + $0x2b0] sm:$0xff]  }
  0x2b   :  { %2679 = vmatpush3.bf16.msra.mxu0 %v2986_v58  ;;  %v3038_v58 = vld [vmem:[%s3892_s1 + $0x278] sm:$0xff]  }
  0x2c   :  { %2680 = vmatprep.subr.bf16.mxu0 %v2989_v60  ;;  %v84_v60 = vrot.slane %v70_v56, %v3317_v41  ;;  %v3084_v56 = vld [vmem:[%s3892_s1 + $0x450] sm:$0xff]  }
  0x2d   :  { %2701 = vmatpush3.bf16.msra.mxu1 %v2988_v59  ;;  %v85_v59 = vcombine.high %v77_v55, %v77_v55 }
  0x2e   :  { %2702 = vmatprep.subr.bf16.mxu1 %v2991_v61  ;;  %v3040_v61 = vld [vmem:[%s3892_s1 + $0x2f8] sm:$0xff]  }
  0x2f   :  { %2681 = vmatpush3.bf16.msra.mxu0 %v2990_v62  ;;  %v3039_v62 = vld [vmem:[%s3892_s1 + $0x238] sm:$0xff]  }
  0x30   :  { %2682 = vmatprep.subr.bf16.mxu0 %v2993_v0  ;;  %v86_v0 = vcombine.high %v84_v60, %v84_v60 }
  0x31   :  { %2703 = vmatpush3.bf16.msra.mxu1 %v2992_v63  ;;  %v179_v63 = vpack.c.bf16 %v85_v59, %v85_v59  ;;  %v3087_v59 = vld [vmem:[%s3892_s1 + $0x490] sm:$0xff]  }
  0x32   :  { %2704 = vmatprep.subr.bf16.mxu1 %v2995_v1  ;;  %v3041_v1 = vld [vmem:[%s3892_s1 + $0x2b8] sm:$0xff]  }
  0x33   :  { %2683 = vmatpush3.bf16.msra.mxu0 %v2994_v2  ;;  %v3042_v2 = vld [vmem:[%s3892_s1 + $0x340] sm:$0xff]  }
  0x34   :  { %2684 = vmatprep.subr.bf16.mxu0 %v2997_v4  ;;  %v3045_v4 = vld [vmem:[%s3892_s1 + $0x3c0] sm:$0xff]  }
  0x35   :  { %2705 = vmatpush3.bf16.msra.mxu1 %v2996_v3  ;;  %v181_v3 = vpack.c.bf16 %v86_v0, %v86_v0  ;;  %v3092_v0 = vld [vmem:[%s3892_s1 + $0x460] sm:$0xff]  }
  0x36   :  { %2706 = vmatprep.subr.bf16.mxu1 %v2999_v5  ;;  %v3044_v5 = vld [vmem:[%s3892_s1 + $0x300] sm:$0xff]  }
  0x37   :  { %2685 = vmatpush3.bf16.msra.mxu0 %v2998_v6  ;;  %v178_v6 = vpack.c.bf16 %v77_v55, %v77_v55  ;;  %v3083_v55 = vld [vmem:[%s3892_s1 + $0x488] sm:$0xff]  }
  0x38   :  { %2686 = vmatprep.subr.bf16.mxu0 %v3001_v8  ;;  %v3046_v8 = vld [vmem:[%s3892_s1 + $0x380] sm:$0xff]  }
  0x39   :  { %2707 = vmatpush3.bf16.msra.mxu1 %v3000_v7  ;;  %v180_v7 = vpack.c.bf16 %v84_v60, %v84_v60  ;;  %v3088_v60 = vld [vmem:[%s3892_s1 + $0x458] sm:$0xff]  }
  0x3a   :  { %2708 = vmatprep.subr.bf16.mxu1 %v3003_v9  ;;  %v3047_v9 = vld [vmem:[%s3892_s1 + $0x348] sm:$0xff]  }
  0x3b   :  { %2687 = vmatpush3.bf16.msra.mxu0 %v3002_v11  ;;  %v3048_v11 = vld [vmem:[%s3892_s1 + $0x308] sm:$0xff]  }
  0x3c   :  { %2688 = vmatprep.subr.bf16.mxu0 %v3005_v15  ;;  %v3052_v15 = vld [vmem:[%s3892_s1 + $0x310] sm:$0xff]  }
  0x3d   :  { %2709 = vmatpush3.bf16.msra.mxu1 %v3004_v14  ;;  %v3053_v14 = vld [vmem:[%s3892_s1 + $0x3d0] sm:$0xff]  }
  0x3e   :  { %2710 = vmatprep.subr.bf16.mxu1 %v3007_v18  ;;  %v3057_v18 = vld [vmem:[%s3892_s1 + $0x3d8] sm:$0xff]  }
  0x3f   :  { %2689 = vmatpush3.bf16.msra.mxu0 %v3006_v19  ;;  %v3056_v19 = vld [vmem:[%s3892_s1 + $0x318] sm:$0xff]  }
  0x40   :  { %2718 = vmatprep.subr.bf16.mxu0 %v3009_v23  ;;  %v3060_v23 = vld [vmem:[%s3892_s1 + $0x320] sm:$0xff]  }
  0x41   :  { %2711 = vmatpush3.bf16.msra.mxu1 %v3008_v22  ;;  %v3061_v22 = vld [vmem:[%s3892_s1 + $0x3e0] sm:$0xff]  }
  0x42   :  { %2740 = vmatprep.subr.bf16.mxu1 %v3012_v25  ;;  %1887 = vmatmul.mubr.bf16.vlgmr.msra.gmra.mrb[4].mxu0 %v174_v27  ;;  %v3063_v25 = vld [vmem:[%s3892_s1 + $0x368] sm:$0xff]  }
  0x43   :  { %2719 = vmatpush3.bf16.msra.mxu0 %v3011_v26  ;;  %1966 = vmatprep.mubr.bf16.mxu0 %v179_v63  ;;  %v3065_v26 = vld [vmem:[%s3892_s1 + $0x3e8] sm:$0xff]   ;;  %v3091_v63 = vld [vmem:[%s3892_s1 + $0x498] sm:$0xff]  }
  0x44   :  { %1927 = vmatmul.mubr.bf16.vlgmr.msra.gmra.mrb[4].mxu1 %v176_v28  ;;  %2720 = vmatprep.subr.bf16.mxu0 %v3014_v30  ;;  %v3064_v27 = vld [vmem:[%s3892_s1 + $0x328] sm:$0xff]   ;;  %v3069_v30 = vld [vmem:[%s3892_s1 + $0x3f0] sm:$0xff]  }
  0x45   :  { %2741 = vmatpush3.bf16.msra.mxu1 %v3013_v29  ;;  %2006 = vmatprep.mubr.bf16.mxu1 %v181_v3  ;;  %v3066_v28 = vld [vmem:[%s3892_s1 + $0x3a8] sm:$0xff]   ;;  %v3067_v29 = vld [vmem:[%s3892_s1 + $0x370] sm:$0xff]   ;;  %v3095_v3 = vld [vmem:[%s3892_s1 + $0x4a0] sm:$0xff]  }
  0x46   :  { %2742 = vmatprep.subr.bf16.mxu1 %v3016_v31  ;;  %v3068_v31 = vld [vmem:[%s3892_s1 + $0x330] sm:$0xff]  }
  0x47   :  { %2721 = vmatpush3.bf16.msra.mxu0 %v3015_v32  ;;  %v25_v32 = vld [vmem:[%s3891_s0 + $0x18] sm:$0xff] }
  0x48   :  { %2722 = vmatprep.subr.bf16.mxu0 %v3018_v34  ;;  %v94_v34 = vrot.slane %v25_v32, %v3317_v41 }
  0x49   :  { %2743 = vmatpush3.bf16.msra.mxu1 %v3017_v33  ;;  %v3070_v33 = vld [vmem:[%s3892_s1 + $0x3b0] sm:$0xff]  }
  0x4a   :  { %2744 = vmatprep.subr.bf16.mxu1 %v3020_v35  ;;  %v87_v35 = vcombine.high %v25_v32, %v25_v32  ;;  %v3114_v32 = vld [vmem:[%s3892_s1 + $0x508] sm:$0xff]  }
  0x4b   :  { %2723 = vmatpush3.bf16.msra.mxu0 %v3019_v36  ;;  %v3071_v36 = vld [vmem:[%s3892_s1 + $0x378] sm:$0xff]  }
  0x4c   :  { %2724 = vmatprep.subr.bf16.mxu0 %v3022_v38  ;;  %v102_v38 = vcombine.high %v94_v34, %v94_v34 }
  0x4d   :  { %2745 = vmatpush3.bf16.msra.mxu1 %v3021_v37  ;;  %v3073_v37 = vld [vmem:[%s3892_s1 + $0x3f8] sm:$0xff]  }
  0x4e   :  { %2746 = vmatprep.subr.bf16.mxu1 %v3024_v39  ;;  %v101_v39 = vrot.slane %v87_v35, %v3317_v41  ;;  %v3119_v35 = vld [vmem:[%s3892_s1 + $0x5d0] sm:$0xff]  }
  0x4f   :  { %2725 = vmatpush3.bf16.msra.mxu0 %v3023_v40  ;;  %v3072_v40 = vld [vmem:[%s3892_s1 + $0x338] sm:$0xff]  }
  0x50   :  { %2726 = vmatprep.subr.bf16.mxu0 %v3026_v43  ;;  %v3074_v43 = vld [vmem:[%s3892_s1 + $0x3b8] sm:$0xff]  }
  0x51   :  { %2747 = vmatpush3.bf16.msra.mxu1 %v3025_v42  ;;  %v183_v42 = vpack.c.bf16 %v102_v38, %v102_v38  ;;  %v3121_v38 = vld [vmem:[%s3892_s1 + $0x558] sm:$0xff]  }
  0x52   :  { %2748 = vmatprep.subr.bf16.mxu1 %v3028_v44  ;;  %v103_v44 = vcombine.high %v101_v39, %v101_v39 }
  0x53   :  { %2727 = vmatpush3.bf16.msra.mxu0 %v3027_v45  ;;  %v3075_v45 = vld [vmem:[%s3892_s1 + $0x440] sm:$0xff]  }
  0x54   :  { %2728 = vmatprep.subr.bf16.mxu0 %v3030_v47  ;;  %v3078_v47 = vld [vmem:[%s3892_s1 + $0x4c0] sm:$0xff]  }
  0x55   :  { %2749 = vmatpush3.bf16.msra.mxu1 %v3029_v46  ;;  %v185_v46 = vpack.c.bf16 %v103_v44, %v103_v44  ;;  %v3127_v44 = vld [vmem:[%s3892_s1 + $0x5e0] sm:$0xff]  }
  0x56   :  { %2750 = vmatprep.subr.bf16.mxu1 %v3032_v48  ;;  %v3077_v48 = vld [vmem:[%s3892_s1 + $0x400] sm:$0xff]  }
  0x57   :  { %2729 = vmatpush3.bf16.msra.mxu0 %v3031_v49  ;;  %v182_v49 = vpack.c.bf16 %v94_v34, %v94_v34  ;;  %v3117_v34 = vld [vmem:[%s3892_s1 + $0x550] sm:$0xff]  }
  0x58   :  { %2730 = vmatprep.subr.bf16.mxu0 %v3034_v51  ;;  %v3079_v51 = vld [vmem:[%s3892_s1 + $0x480] sm:$0xff]  }
  0x59   :  { %2751 = vmatpush3.bf16.msra.mxu1 %v3033_v50  ;;  %v184_v50 = vpack.c.bf16 %v101_v39, %v101_v39  ;;  %v3123_v39 = vld [vmem:[%s3892_s1 + $0x5d8] sm:$0xff]  }
  0x5a   :  { %2752 = vmatprep.subr.bf16.mxu1 %v3036_v52  ;;  %v3080_v52 = vld [vmem:[%s3892_s1 + $0x448] sm:$0xff]  }
  0x5b   :  { %2731 = vmatpush3.bf16.msra.mxu0 %v3035_v54  ;;  %v3081_v54 = vld [vmem:[%s3892_s1 + $0x408] sm:$0xff]  }
  0x5c   :  { %2732 = vmatprep.subr.bf16.mxu0 %v3038_v58  ;;  %v3085_v58 = vld [vmem:[%s3892_s1 + $0x410] sm:$0xff]  }
  0x5d   :  { %2753 = vmatpush3.bf16.msra.mxu1 %v3037_v57  ;;  %v3086_v57 = vld [vmem:[%s3892_s1 + $0x4d0] sm:$0xff]  }
  0x5e   :  { %2754 = vmatprep.subr.bf16.mxu1 %v3040_v61  ;;  %v3090_v61 = vld [vmem:[%s3892_s1 + $0x4d8] sm:$0xff]  }
  0x5f   :  { %2733 = vmatpush3.bf16.msra.mxu0 %v3039_v62  ;;  %v3089_v62 = vld [vmem:[%s3892_s1 + $0x418] sm:$0xff]  }
  0x60   :  { %2762 = vmatprep.subr.bf16.mxu0 %v3042_v2  ;;  %v3093_v2 = vld [vmem:[%s3892_s1 + $0x420] sm:$0xff]  }
  0x61   :  { %2755 = vmatpush3.bf16.msra.mxu1 %v3041_v1  ;;  %v3094_v1 = vld [vmem:[%s3892_s1 + $0x4e0] sm:$0xff]  }
  0x62   :  { %2784 = vmatprep.subr.bf16.mxu1 %v3045_v4  ;;  %1967 = vmatmul.mubr.bf16.vlgmr.msra.gmra.mrb[8].mxu0 %v178_v6  ;;  %v3096_v4 = vld [vmem:[%s3892_s1 + $0x468] sm:$0xff]  }
  0x63   :  { %2763 = vmatpush3.bf16.msra.mxu0 %v3044_v5  ;;  %2046 = vmatprep.mubr.bf16.mxu0 %v183_v42  ;;  %v3098_v5 = vld [vmem:[%s3892_s1 + $0x4e8] sm:$0xff]   ;;  %v3124_v42 = vld [vmem:[%s3892_s1 + $0x598] sm:$0xff]  }
  0x64   :  { %2007 = vmatmul.mubr.bf16.vlgmr.msra.gmra.mrb[8].mxu1 %v180_v7  ;;  %2764 = vmatprep.subr.bf16.mxu0 %v3047_v9  ;;  %v3097_v6 = vld [vmem:[%s3892_s1 + $0x428] sm:$0xff]   ;;  %v3102_v9 = vld [vmem:[%s3892_s1 + $0x4f0] sm:$0xff]  }
  0x65   :  { %2785 = vmatpush3.bf16.msra.mxu1 %v3046_v8  ;;  %2086 = vmatprep.mubr.bf16.mxu1 %v185_v46  ;;  %v3099_v7 = vld [vmem:[%s3892_s1 + $0x4a8] sm:$0xff]   ;;  %v3100_v8 = vld [vmem:[%s3892_s1 + $0x470] sm:$0xff]   ;;  %v3128_v46 = vld [vmem:[%s3892_s1 + $0x5a0] sm:$0xff]  }
  0x66   :  { %2786 = vmatprep.subr.bf16.mxu1 %v3049_v10  ;;  %v3101_v10 = vld [vmem:[%s3892_s1 + $0x430] sm:$0xff]  }
  0x67   :  { %2765 = vmatpush3.bf16.msra.mxu0 %v3048_v11  ;;  %v26_v11 = vld [vmem:[%s3891_s0 + $0x20] sm:$0xff] }
  0x68   :  { %2766 = vmatprep.subr.bf16.mxu0 %v3051_v13  ;;  %v111_v13 = vrot.slane %v26_v11, %v3317_v41 }
  0x69   :  { %2787 = vmatpush3.bf16.msra.mxu1 %v3050_v12  ;;  %v3103_v12 = vld [vmem:[%s3892_s1 + $0x4b0] sm:$0xff]  }
  0x6a   :  { %2788 = vmatprep.subr.bf16.mxu1 %v3053_v14  ;;  %v104_v14 = vcombine.high %v26_v11, %v26_v11 }
  0x6b   :  { %2767 = vmatpush3.bf16.msra.mxu0 %v3052_v15  ;;  %v3104_v15 = vld [vmem:[%s3892_s1 + $0x478] sm:$0xff]  }
  0x6c   :  { %2768 = vmatprep.subr.bf16.mxu0 %v3055_v17  ;;  %v119_v17 = vcombine.high %v111_v13, %v111_v13 }
  0x6d   :  { %2789 = vmatpush3.bf16.msra.mxu1 %v3054_v16  ;;  %v3106_v16 = vld [vmem:[%s3892_s1 + $0x4f8] sm:$0xff]  }
  0x6e   :  { %2790 = vmatprep.subr.bf16.mxu1 %v3057_v18  ;;  %v118_v18 = vrot.slane %v104_v14, %v3317_v41 }
  0x6f   :  { %2769 = vmatpush3.bf16.msra.mxu0 %v3056_v19  ;;  %v3105_v19 = vld [vmem:[%s3892_s1 + $0x438] sm:$0xff]  }
  0x70   :  { %2770 = vmatprep.subr.bf16.mxu0 %v3059_v21  ;;  %v3107_v21 = vld [vmem:[%s3892_s1 + $0x4b8] sm:$0xff]  }
  0x71   :  { %2791 = vmatpush3.bf16.msra.mxu1 %v3058_v20  ;;  %v187_v20 = vpack.c.bf16 %v119_v17, %v119_v17 }
  0x72   :  { %2792 = vmatprep.subr.bf16.mxu1 %v3061_v22  ;;  %v120_v22 = vcombine.high %v118_v18, %v118_v18 }
  0x73   :  { %2771 = vmatpush3.bf16.msra.mxu0 %v3060_v23  ;;  %v3108_v23 = vld [vmem:[%s3892_s1 + $0x540] sm:$0xff]  }
  0x74   :  { %2772 = vmatprep.subr.bf16.mxu0 %v3063_v25  ;;  %v3111_v25 = vld [vmem:[%s3892_s1 + $0x5c0] sm:$0xff]  }
  0x75   :  { %2793 = vmatpush3.bf16.msra.mxu1 %v3062_v24  ;;  %v189_v24 = vpack.c.bf16 %v120_v22, %v120_v22 }
  0x76   :  { %2794 = vmatprep.subr.bf16.mxu1 %v3065_v26  ;;  %v3110_v26 = vld [vmem:[%s3892_s1 + $0x500] sm:$0xff]  }
  0x77   :  { %2773 = vmatpush3.bf16.msra.mxu0 %v3064_v27  ;;  %v186_v27 = vpack.c.bf16 %v111_v13, %v111_v13 }
  0x78   :  { %2774 = vmatprep.subr.bf16.mxu0 %v3067_v29  ;;  %v3112_v29 = vld [vmem:[%s3892_s1 + $0x580] sm:$0xff]  }
  0x79   :  { %2795 = vmatpush3.bf16.msra.mxu1 %v3066_v28  ;;  %v188_v28 = vpack.c.bf16 %v118_v18, %v118_v18 }
  0x7a   :  { %2796 = vmatprep.subr.bf16.mxu1 %v3069_v30  ;;  %v3113_v30 = vld [vmem:[%s3892_s1 + $0x548] sm:$0xff]  }
  0x7b   :  { %2775 = vmatpush3.bf16.msra.mxu0 %v3068_v31  ;;  %v3115_v31 = vld [vmem:[%s3892_s1 + $0x5c8] sm:$0xff]  }
  0x7c   :  { %2776 = vmatprep.subr.bf16.mxu0 %v3071_v36  ;;  %v3118_v36 = vld [vmem:[%s3892_s1 + $0x510] sm:$0xff]  }
  0x7d   :  { %2797 = vmatpush3.bf16.msra.mxu1 %v3070_v33  ;;  %v3116_v33 = vld [vmem:[%s3892_s1 + $0x588] sm:$0xff]  }
  0x7e   :  { %2798 = vmatprep.subr.bf16.mxu1 %v3073_v37  ;;  %v3120_v37 = vld [vmem:[%s3892_s1 + $0x590] sm:$0xff]  }
  0x7f   :  { %2777 = vmatpush3.bf16.msra.mxu0 %v3072_v40  ;;  %v3122_v40 = vld [vmem:[%s3892_s1 + $0x518] sm:$0xff]  }
  0x80   :  { %2806 = vmatprep.subr.bf16.mxu0 %v3075_v45  ;;  %v3126_v45 = vld [vmem:[%s3892_s1 + $0x520] sm:$0xff]  }
  0x81   :  { %2799 = vmatpush3.bf16.msra.mxu1 %v3074_v43  ;;  %v3125_v43 = vld [vmem:[%s3892_s1 + $0x560] sm:$0xff]  }
  0x82   :  { %2828 = vmatprep.subr.bf16.mxu1 %v3078_v47  ;;  %2047 = vmatmul.mubr.bf16.vlgmr.msra.gmra.mrb[12].mxu0 %v182_v49  ;;  %v3129_v47 = vld [vmem:[%s3892_s1 + $0x568] sm:$0xff]  }
  0x83   :  { %2807 = vmatpush3.bf16.msra.mxu0 %v3077_v48  ;;  %2126 = vmatprep.mubr.bf16.mxu0 %v187_v20  ;;  %v3131_v48 = vld [vmem:[%s3892_s1 + $0x5e8] sm:$0xff]  }
  0x84   :  { %2087 = vmatmul.mubr.bf16.vlgmr.msra.gmra.mrb[12].mxu1 %v184_v50  ;;  %2808 = vmatprep.subr.bf16.mxu0 %v3080_v52  ;;  %v3130_v49 = vld [vmem:[%s3892_s1 + $0x528] sm:$0xff]   ;;  %v3135_v52 = vld [vmem:[%s3892_s1 + $0x5f0] sm:$0xff]  }
  0x85   :  { %2829 = vmatpush3.bf16.msra.mxu1 %v3079_v51  ;;  %2166 = vmatprep.mubr.bf16.mxu1 %v189_v24  ;;  %v3132_v50 = vld [vmem:[%s3892_s1 + $0x5a8] sm:$0xff]   ;;  %v3133_v51 = vld [vmem:[%s3892_s1 + $0x570] sm:$0xff]  }
  0x86   :  { %2830 = vmatprep.subr.bf16.mxu1 %v3082_v53  ;;  %v3134_v53 = vld [vmem:[%s3892_s1 + $0x530] sm:$0xff]  }
  0x87   :  { %2809 = vmatpush3.bf16.msra.mxu0 %v3081_v54  ;;  %v27_v54 = vld [vmem:[%s3891_s0 + $0x28] sm:$0xff] }
  0x88   :  { %2810 = vmatprep.subr.bf16.mxu0 %v3084_v56  ;;  %v128_v56 = vrot.slane %v27_v54, %v3317_v41 }
  0x89   :  { %2831 = vmatpush3.bf16.msra.mxu1 %v3083_v55  ;;  %v3136_v55 = vld [vmem:[%s3892_s1 + $0x5b0] sm:$0xff]  }
  0x8a   :  { %2832 = vmatprep.subr.bf16.mxu1 %v3086_v57  ;;  %v121_v57 = vcombine.high %v27_v54, %v27_v54 }
  0x8b   :  { %2811 = vmatpush3.bf16.msra.mxu0 %v3085_v58  ;;  %v3137_v58 = vld [vmem:[%s3892_s1 + $0x578] sm:$0xff]  }
  0x8c   :  { %2812 = vmatprep.subr.bf16.mxu0 %v3088_v60  ;;  %v136_v60 = vcombine.high %v128_v56, %v128_v56 }
  0x8d   :  { %2833 = vmatpush3.bf16.msra.mxu1 %v3087_v59  ;;  %v3139_v59 = vld [vmem:[%s3892_s1 + $0x5f8] sm:$0xff]  }
  0x8e   :  { %2834 = vmatprep.subr.bf16.mxu1 %v3090_v61  ;;  %v135_v61 = vrot.slane %v121_v57, %v3317_v41  ;;  %v3142_v41 = vld [vmem:[%s3892_s1 + $0x600] sm:$0xff]  }
  0x8f   :  { %2813 = vmatpush3.bf16.msra.mxu0 %v3089_v62  ;;  %v191_v62 = vpack.c.bf16 %v136_v60, %v136_v60 }
  0x90   :  { %2814 = vmatprep.subr.bf16.mxu0 %v3092_v0  ;;  %v3138_v0 = vld [vmem:[%s3892_s1 + $0x538] sm:$0xff]  }
  0x91   :  { %2835 = vmatpush3.bf16.msra.mxu1 %v3091_v63  ;;  %v137_v63 = vcombine.high %v135_v61, %v135_v61 }
  0x92   :  { %2836 = vmatprep.subr.bf16.mxu1 %v3094_v1  ;;  %v3140_v1 = vld [vmem:[%s3892_s1 + $0x5b8] sm:$0xff]  }
  0x93   :  { %2815 = vmatpush3.bf16.msra.mxu0 %v3093_v2  ;;  %v193_v2 = vpack.c.bf16 %v137_v63, %v137_v63 }
  0x94   :  { %2816 = vmatprep.subr.bf16.mxu0 %v3096_v4  ;;  %v192_v4 = vpack.c.bf16 %v135_v61, %v135_v61 }
  0x95   :  { %2837 = vmatpush3.bf16.msra.mxu1 %v3095_v3  ;;  %v190_v3 = vpack.c.bf16 %v128_v56, %v128_v56 }
  0x96   :  { %2838 = vmatprep.subr.bf16.mxu1 %v3098_v5  ;;  %v3179_v5 = vmov 0.0  }
  0x97   :  { %2817 = vmatpush3.bf16.msra.mxu0 %v3097_v6 }
  0x98   :  { %2818 = vmatprep.subr.bf16.mxu0 %v3100_v8 }
  0x99   :  { %2839 = vmatpush3.bf16.msra.mxu1 %v3099_v7 }
  0x9a   :  { %2840 = vmatprep.subr.bf16.mxu1 %v3102_v9 }
  0x9b   :  { %2819 = vmatpush3.bf16.msra.mxu0 %v3101_v10 }
  0x9c   :  { %2820 = vmatprep.subr.bf16.mxu0 %v3104_v15 }
  0x9d   :  { %2841 = vmatpush3.bf16.msra.mxu1 %v3103_v12 }
  0x9e   :  { %2842 = vmatprep.subr.bf16.mxu1 %v3106_v16 }
  0x9f   :  { %2821 = vmatpush3.bf16.msra.mxu0 %v3105_v19 }
  0xa0   :  { %2850 = vmatprep.subr.bf16.mxu0 %v3108_v23 }
  0xa1   :  { %2843 = vmatpush3.bf16.msra.mxu1 %v3107_v21 }
  0xa2   :  { %2872 = vmatprep.subr.bf16.mxu1 %v3111_v25  ;;  %2127 = vmatmul.mubr.bf16.vlgmr.msra.gmra.mrb[16].mxu0 %v186_v27 }
  0xa3   :  { %2851 = vmatpush3.bf16.msra.mxu0 %v3110_v26  ;;  %2206 = vmatprep.mubr.bf16.mxu0 %v191_v62 }
  0xa4   :  { %2167 = vmatmul.mubr.bf16.vlgmr.msra.gmra.mrb[16].mxu1 %v188_v28  ;;  %2852 = vmatprep.subr.bf16.mxu0 %v3113_v30 }
  0xa5   :  { %2873 = vmatpush3.bf16.msra.mxu1 %v3112_v29  ;;  %2246 = vmatprep.mubr.bf16.mxu1 %v193_v2 }
  0xa6   :  { %2874 = vmatprep.subr.bf16.mxu1 %v3115_v31 }
  0xa7   :  { %2853 = vmatpush3.bf16.msra.mxu0 %v3114_v32 }
  0xa8   :  { %2854 = vmatprep.subr.bf16.mxu0 %v3117_v34 }
  0xa9   :  { %2875 = vmatpush3.bf16.msra.mxu1 %v3116_v33 }
  0xaa   :  { %2876 = vmatprep.subr.bf16.mxu1 %v3119_v35 }
  0xab   :  { %2855 = vmatpush3.bf16.msra.mxu0 %v3118_v36 }
  0xac   :  { %2856 = vmatprep.subr.bf16.mxu0 %v3121_v38 }
  0xad   :  { %2877 = vmatpush3.bf16.msra.mxu1 %v3120_v37 }
  0xae   :  { %2878 = vmatprep.subr.bf16.mxu1 %v3123_v39 }
  0xaf   :  { %2857 = vmatpush3.bf16.msra.mxu0 %v3122_v40 }
  0xb0   :  { %2858 = vmatprep.subr.bf16.mxu0 %v3125_v43 }
  0xb1   :  { %2879 = vmatpush3.bf16.msra.mxu1 %v3124_v42 }
  0xb2   :  { %2880 = vmatprep.subr.bf16.mxu1 %v3127_v44 }
  0xb3   :  { %2859 = vmatpush3.bf16.msra.mxu0 %v3126_v45 }
  0xb4   :  { %2860 = vmatprep.subr.bf16.mxu0 %v3129_v47 }
  0xb5   :  { %2881 = vmatpush3.bf16.msra.mxu1 %v3128_v46 }
  0xb6   :  { %2882 = vmatprep.subr.bf16.mxu1 %v3131_v48 }
  0xb7   :  { %2861 = vmatpush3.bf16.msra.mxu0 %v3130_v49 }
  0xb8   :  { %2862 = vmatprep.subr.bf16.mxu0 %v3133_v51 }
  0xb9   :  { %2883 = vmatpush3.bf16.msra.mxu1 %v3132_v50 }
  0xba   :  { %2884 = vmatprep.subr.bf16.mxu1 %v3135_v52 }
  0xbb   :  { %2863 = vmatpush3.bf16.msra.mxu0 %v3134_v53 }
  0xbc   :  { %2864 = vmatprep.subr.bf16.mxu0 %v3137_v58 }
  0xbd   :  { %2885 = vmatpush3.bf16.msra.mxu1 %v3136_v55 }
  0xbe   :  { %2886 = vmatprep.subr.bf16.mxu1 %v3139_v59 }
  0xbf   :  { %2865 = vmatpush3.bf16.msra.mxu0 %v3138_v0 }
  0xc0   :  { %2908 = vmatprep.subr.bf16.mxu0 %v3179_v5 }
  0xc1   :  { %2887 = vmatpush3.bf16.msra.mxu1 %v3140_v1 }
  0xc2   :  { %2920 = vmatprep.subr.bf16.mxu1 %v3179_v5 }
  0xc3   :  { %10 = vsyncpa [#allocation3], 0  ;;  %2207 = vmatmul.mubr.bf16.vlgmr.msra.gmra.mrb[20].mxu0 %v190_v3  ;;  %v3143_v6 = vld [vmem:[%s3892_s1 + $0x608] sm:$0xff]   ;;  %vm3180_vm0 = vmmov 0   ;;  %v3144_v7 = vld [vmem:[%s3892_s1 + $0x610] sm:$0xff]   ;;  %vm1770_vm1 = vcmask 523264  }
  0xc4   :  { %2247 = vmatmul.mubr.bf16.vlgmr.msra.gmra.mrb[20].mxu1 %v192_v4  ;;  %2909 = vmatpush3.bf16.msra.mxu0 %v3142_v41  ;;  %v3145_v8 = vld [vmem:[%s3892_s1 + $0x618] sm:$0xff]   ;;  %v2422_v9 = vld.sshfl [vmem:[%s3891_s0 + $0x30] sm:$0x3 pattern:$0x76325410]  ;;  %v3146_v24 = vld [vmem:[%s3894_s3] sm:$0xff]  }
  0xc5   :  { %2916 = vmatprep.mubr.msk.bf16.mxu0 %vm3180_vm0, %v3179_v5  ;;  %2910 = vmatprep.subr.bf16.mxu0 %v3179_v5  ;;  %v194_v10 = vpack.c.bf16 %v2422_v9, %v2422_v9  ;;  %v2423_v13 = vld [vmem:[%s3893_s2] ss:$0 sm:$0xff]  ;;  %v3147_v25 = vld [vmem:[%s3894_s3 + $0x8] sm:$0xff]   ;;  %v3148_v26 = vld [vmem:[%s3894_s3 + $0x10] sm:$0xff]   ;;  %s3181_s15 = smov [#allocation2]  }
  0xc6   :  { %2936 = vmatprep.mubr.msk.bf16.mxu1 %vm3180_vm0, %v3179_v5  ;;  %2921 = vmatpush3.bf16.msra.mxu1 %v3146_v24  ;;  %v3149_v35 = vld [vmem:[%s3894_s3 + $0x18] sm:$0xff]   ;;  %v3150_v39 = vld [vmem:[%s3894_s3 + $0x20] sm:$0xff]   ;;  %v3151_v42 = vld [vmem:[%s3894_s3 + $0x28] sm:$0xff]   ;;  %s2414_s16 = sshll.u32 %s3181_s15, 4  ;;  %s2415_s16 = int_to_ptr.vmem [resolvable:$true] %s2414_s16 }
  0xc7   :  { %2922 = vmatprep.subr.bf16.mxu1 %v3179_v5  ;;  %v3152_v43 = vld [vmem:[%s3894_s3 + $0x30] sm:$0xff]   ;;  %v3153_v44 = vld [vmem:[%s3894_s3 + $0x38] sm:$0xff]   ;;  %s3154_s17 = scalar_lea.vmem %s2415_s16, 32  ;;  %p3159_p1 = scmp.lt.s32.totalorder %s2415_s16, %s2415_s16 }
  0xc8   :  { %2911 = vmatpush3.bf16.msra.mxu0 %v3143_v6  ;;  %p3155_p0 = scmp.ne.s32.totalorder %s2415_s16, %s3154_s17  ;;  %p3160_p2 = scmp.lt.s32.totalorder %s3154_s17, %s3154_s17 }
  0xc9   :  { %2912 = vmatprep.subr.bf16.mxu0 %v3179_v5 }
  0xca   :  { %2923 = vmatpush3.bf16.msra.mxu1 %v3147_v25  ;;  %p3161_p3 = por %p3160_p2, %p3159_p1 }
  0xcb   :  { %2924 = vmatprep.subr.bf16.mxu1 %v3179_v5 }
  0xcc   :  { %2913 = vmatpush3.bf16.msra.mxu0 %v3144_v7  ;;  %p3162_p4 = pnand %p3161_p3, %p3155_p0 }
  0xcd   :  { %2914 = vmatprep.subr.bf16.mxu0 %v3179_v5 }
  0xce   :  { %2925 = vmatpush3.bf16.msra.mxu1 %v3148_v26 }
  0xcf   :  { %2926 = vmatprep.subr.bf16.mxu1 %v3179_v5 }
  0xd0   :  { %2915 = vmatpush3.bf16.msra.mxu0 %v3145_v8 }
  0xd2   :  { %2927 = vmatpush3.bf16.msra.mxu1 %v3149_v35  ;;  %v2621_v35 = vld [vmem:[%s3895_s4] ss:$0 sm:$0xff] }
  0xd3   :  { %2917 = vmatmul.mubr.msk.bf16.vlgmr.msra.gmra.mrb[24].mxu0 %vm1770_vm1, %v194_v10  ;;  %2928 = vmatprep.subr.bf16.mxu1 %v3179_v5 }
  0xd6   :  { %2929 = vmatpush3.bf16.msra.mxu1 %v3150_v39 }
  0xd7   :  { %2930 = vmatprep.subr.bf16.mxu1 %v3179_v5 }
  0xda   :  { %2931 = vmatpush3.bf16.msra.mxu1 %v3151_v42 }
  0xdb   :  { %2932 = vmatprep.subr.bf16.mxu1 %v3179_v5 }
  0xde   :  { %2933 = vmatpush3.bf16.msra.mxu1 %v3152_v43 }
  0xdf   :  { %2934 = vmatprep.subr.bf16.mxu1 %v3179_v5 }
  0xe2   :  { %2935 = vmatpush3.bf16.msra.mxu1 %v3153_v44 }
  0xf5   :  { %v2646_v11 = vpop.f32.mrb[0].mxu0 }
  0xf6   :  { %v2647_v14 = vpop.f32.mrb[1].mxu0 }
  0xf7   :  { %v2668_v12 = vpop.f32.mrb[0].mxu1  ;;  %v2648_v16 = vadd.f32 %v2647_v14, %v2646_v11  ;;  %v2649_v17 = vpop.f32.mrb[2].mxu0 }
  0xf8   :  { %v2669_v15 = vpop.f32.mrb[1].mxu1  ;;  %v2650_v20 = vpop.f32.mrb[3].mxu0 }
  0xf9   :  { %v2670_v18 = vadd.f32 %v2669_v15, %v2668_v12  ;;  %v2671_v19 = vpop.f32.mrb[2].mxu1  ;;  %v1809_v22 = vadd.f32 %v2648_v16, %v2423_v13 }
  0xfa   :  { %v2672_v21 = vpop.f32.mrb[3].mxu1 }
  0xfb   :  { %v1849_v23 = vadd.f32 %v2670_v18, %v1809_v22 }
 0x115   :  { %v2690_v27 = vpop.f32.mrb[4].mxu0 }
 0x116   :  { %v2691_v29 = vpop.f32.mrb[5].mxu0 }
 0x117   :  { %v2712_v28 = vpop.f32.mrb[4].mxu1  ;;  %v2692_v31 = vadd.f32 %v2691_v29, %v2690_v27  ;;  %v2693_v32 = vpop.f32.mrb[6].mxu0 }
 0x118   :  { %v2713_v30 = vpop.f32.mrb[5].mxu1  ;;  %v2694_v36 = vpop.f32.mrb[7].mxu0 }
 0x119   :  { %v2714_v33 = vadd.f32 %v2713_v30, %v2712_v28  ;;  %v2715_v34 = vpop.f32.mrb[6].mxu1  ;;  %v1889_v38 = vadd.f32 %v2692_v31, %v1849_v23 }
 0x11a   :  { %v2716_v37 = vpop.f32.mrb[7].mxu1 }
 0x11b   :  { %v1929_v40 = vadd.f32 %v2714_v33, %v1889_v38 }
 0x135   :  { %v2734_v45 = vpop.f32.mrb[8].mxu0 }
 0x136   :  { %v2735_v47 = vpop.f32.mrb[9].mxu0 }
 0x137   :  { %v2756_v46 = vpop.f32.mrb[8].mxu1  ;;  %v2736_v49 = vadd.f32 %v2735_v47, %v2734_v45  ;;  %v2737_v50 = vpop.f32.mrb[10].mxu0 }
 0x138   :  { %v2757_v48 = vpop.f32.mrb[9].mxu1  ;;  %v2738_v53 = vpop.f32.mrb[11].mxu0 }
 0x139   :  { %v2758_v51 = vadd.f32 %v2757_v48, %v2756_v46  ;;  %v2759_v52 = vpop.f32.mrb[10].mxu1  ;;  %v1969_v55 = vadd.f32 %v2736_v49, %v1929_v40 }
 0x13a   :  { %v2760_v54 = vpop.f32.mrb[11].mxu1 }
 0x13b   :  { %v2009_v56 = vadd.f32 %v2758_v51, %v1969_v55 }
 0x155   :  { %v2778_v57 = vpop.f32.mrb[12].mxu0 }
 0x156   :  { %v2779_v59 = vpop.f32.mrb[13].mxu0 }
 0x157   :  { %v2800_v58 = vpop.f32.mrb[12].mxu1  ;;  %v2780_v61 = vadd.f32 %v2779_v59, %v2778_v57  ;;  %v2781_v62 = vpop.f32.mrb[14].mxu0 }
 0x158   :  { %v2801_v60 = vpop.f32.mrb[13].mxu1  ;;  %v2782_v1 = vpop.f32.mrb[15].mxu0 }
 0x159   :  { %v2802_v63 = vadd.f32 %v2801_v60, %v2800_v58  ;;  %v2803_v0 = vpop.f32.mrb[14].mxu1  ;;  %v2049_v41 = vadd.f32 %v2780_v61, %v2009_v56 }
 0x15a   :  { %v2804_v2 = vpop.f32.mrb[15].mxu1 }
 0x15b   :  { %v2089_v3 = vadd.f32 %v2802_v63, %v2049_v41 }
 0x175   :  { %v2822_v4 = vpop.f32.mrb[16].mxu0 }
 0x176   :  { %v2823_v6 = vpop.f32.mrb[17].mxu0 }
 0x177   :  { %v2844_v5 = vpop.f32.mrb[16].mxu1  ;;  %v2824_v8 = vadd.f32 %v2823_v6, %v2822_v4  ;;  %v2825_v9 = vpop.f32.mrb[18].mxu0 }
 0x178   :  { %v2845_v7 = vpop.f32.mrb[17].mxu1  ;;  %v2826_v12 = vpop.f32.mrb[19].mxu0 }
 0x179   :  { %v2846_v10 = vadd.f32 %v2845_v7, %v2844_v5  ;;  %v2847_v11 = vpop.f32.mrb[18].mxu1  ;;  %v2129_v14 = vadd.f32 %v2824_v8, %v2089_v3 }
 0x17a   :  { %v2848_v13 = vpop.f32.mrb[19].mxu1 }
 0x17b   :  { %v2169_v15 = vadd.f32 %v2846_v10, %v2129_v14 }
 0x196   :  { %v2866_v16 = vpop.f32.mrb[20].mxu0 }
 0x197   :  { %v2888_v17 = vpop.f32.mrb[20].mxu1  ;;  %v2867_v18 = vpop.f32.mrb[21].mxu0 }
 0x198   :  { %v2889_v19 = vpop.f32.mrb[21].mxu1  ;;  %v2868_v20 = vadd.f32 %v2867_v18, %v2866_v16  ;;  %v2869_v21 = vpop.f32.mrb[22].mxu0 }
 0x199   :  { %v2890_v22 = vadd.f32 %v2889_v19, %v2888_v17  ;;  %v2891_v23 = vpop.f32.mrb[22].mxu1  ;;  %v2870_v24 = vpop.f32.mrb[23].mxu0 }
 0x19a   :  { %v2892_v25 = vpop.f32.mrb[23].mxu1  ;;  %v2209_v26 = vadd.f32 %v2868_v20, %v2169_v15 }
 0x19c   :  { %v2249_v27 = vadd.f32 %v2890_v22, %v2209_v26 }
 0x1a6   :  { %v2288_v28 = vpop.f32.mrb[24].mxu0 }
 0x1a7   :  { %v2289_v29 = vadd.f32 %v2288_v28, %v2249_v27  ;;  %v2918_v30 = vpop.f32.mrb[25].mxu0 }
 0x1a8   :  { %v2291_v31 = vpop.f32.mrb[26].mxu0 }
 0x1a9   :  { %v2294_v32 = vmax.f32 %v2289_v29, 0.0  ;;  %v2919_v33 = vpop.f32.mrb[27].mxu0 }
 0x1ab   :  { %v2295_v34 = vpack.c.bf16 %v2294_v32, %v2294_v32 }
 0x1ad   :  { %2937 = vmatmul.mubr.bf16.vlgmr.msra.gmra.mrb[24].mxu1 %v2295_v34 }
 0x280   :  { %v2401_v36 = vpop.f32.mrb[24].mxu1 }
 0x281   :  { %v2402_v37 = vadd.f32 %v2621_v35, %v2401_v36  ;;  %v2938_v38 = vpop.f32.mrb[25].mxu1 }
 0x282   :  { %v2404_v39 = vpop.f32.mrb[26].mxu1 }
 0x283   :  { %2407 = vst [vmem:[#allocation2] sm:$0x3] %v2402_v37  ;;  %v2939_v40 = vpop.f32.mrb[27].mxu1 }
 0x284   :  { %3165 = shalt.err (!%p3162_p4)
}
 0x285   :  { %s3166_s4 = scalar_lea.hbm %s3896_s5, 32 }
 0x286   :  { %p3167_p5 = scmp.ne.s32.totalorder %s3896_s5, %s3166_s4  ;;  %p3170_p6 = scmp.lt.u32.totalorder %s3166_s4, %s3896_s5 }
 0x288   :  { %p3172_p7 = pnand %p3170_p6, %p3167_p5 }
 0x28a   :  { %3175 = shalt.err (!%p3172_p7)
}
 0x28b   :  { %2417 = dma.vmem_to_hbm [thread:$0]  %s2415_s16, 32, %s3896_s5, [#allocation3]  }
 0x28c   :  { %3176 = dma.done.wait [#allocation3], 32  }
 0x28d   :  { %3177 = vsyncadd [#allocation3], 4294967264 }
 0x28e   :  { %2421 = vsyncpa [#allocation3], 1 }

</bundles_post_ra>
